<compile_context>
chip_gen: v7x
topology: tpu7x:2x2x1
jax: 0.10.0
libtpu: 0.0.40
codegen_flags: <defaults>
</compile_context>

<pallas_src>
import jax
import jax.numpy as jnp
from jax import lax
from jax.experimental import pallas as pl
from jax.experimental.pallas import tpu as pltpu

# q @ k^T style contraction (contract last dim of both operands) -> MXU trans_b matmul.
TRANS_B_DIM_NUMBERS = (((1,), (1,)), ((), ()))


def braak_attention_kernel(x_ref, wfc_ref, bfc_ref, wab_ref, bab_ref,
                           wc_ref, bc_ref, wcoral_ref, coralb_ref,
                           a_raw_ref, logits_ref, yprob_ref, yhat_ref):
    H2 = wc_ref.shape[1]

    # --- fc: Linear(L, H1) + ReLU.  bf16 operands on the MXU, f32 accumulation. ---
    x_bf = x_ref[...].astype(jnp.bfloat16)                                   # (N, L)
    h = jnp.dot(x_bf, wfc_ref[...], preferred_element_type=jnp.float32)      # (N, H1) f32
    h = jnp.maximum(h + bfc_ref[...], 0.0)
    h_bf = h.astype(jnp.bfloat16)          # reused for the a|b matmul AND the M matmul

    # --- fused gated-attention projections: one (H1, 2*H2) matmul, lane-aligned split. ---
    ab_pre = jnp.dot(h_bf, wab_ref[...],
                     preferred_element_type=jnp.float32) + bab_ref[...]      # (N, 2*H2) f32
    a = jnp.tanh(ab_pre[:, :H2])           # H2 = 3*128 -> lane-aligned slices
    b = jax.nn.sigmoid(ab_pre[:, H2:])     # f32 elementwise (v5e-safe; bf16 optional on v6e+)
    ab = a * b                                                               # (N, H2) f32

    # --- attention score directly as a lane-dense (1, N) row:  w_c . ab^T on the MXU. ---
    s_row = lax.dot_general(wc_ref[...].astype(jnp.bfloat16),
                            ab.astype(jnp.bfloat16),
                            TRANS_B_DIM_NUMBERS,
                            preferred_element_type=jnp.float32) + bc_ref[...]  # (1, N)
    a_raw_ref[...] = s_row

    # --- stable softmax over the N instances (lane-wise max / sum). ---
    smax = jnp.max(s_row, axis=-1, keepdims=True)
    e = jnp.exp(s_row - smax)
    inv = pl.reciprocal(jnp.sum(e, axis=-1, keepdims=True), approx=False)    # exact: sums to 1
    a_sm = e * inv                                                           # (1, N)

    # --- M = softmax(A) @ h on the MXU, reusing the bf16 copy of h. ---
    M = jnp.dot(a_sm.astype(jnp.bfloat16), h_bf,
                preferred_element_type=jnp.float32)                          # (1, H1)

    # --- CoralLayer: shared weight vector (rank-1 contraction on VPU) + ordinal biases. ---
    logit_base = jnp.sum(M * wcoral_ref[...], axis=-1, keepdims=True)        # (1, 1)
    logits = logit_base + coralb_ref[...]                                    # (1, C-1)
    logits_ref[...] = logits

    # --- Y_prob / Y_hat epilogue in-kernel (EUP/VPU idle here; saves an XLA dispatch). ---
    y_prob = jax.nn.sigmoid(logits)
    yprob_ref[...] = y_prob
    yhat_ref[...] = jnp.sum((y_prob > 0.5).astype(jnp.int32), axis=-1, keepdims=True)

    # TODO(synk): for very large bags (N in the thousands), tile N with a second grid axis
    # and online-softmax accumulators + a validity mask for padded rows; re-derive the tile
    # budget against v7x's 32 MiB scoped VMEM and pad A_raw tiles to 128-lane multiples.


def braak_attention(x, params):
    """Batched Pallas call: grid over bags, weights VMEM-resident across the grid.

    x: (N, L) single bag (PyTorch-style) or (B, N, L) batch of bags.
    """
    squeeze = x.ndim == 2
    if squeeze:
        x = x[None]
    B, N, L = x.shape
    H1 = params["W_fc"].shape[1]
    H2 = params["w_c"].shape[1]
    C1 = params["coral_bias"].shape[1]

    def const(shape):
        # Whole-array block, same block index every grid step -> fetched once, stays resident.
        return pl.BlockSpec(shape, lambda b: (0,) * len(shape))

    in_specs = [
        pl.BlockSpec((None, N, L), lambda b: (b, 0, 0)),   # x: one bag per grid step
        const((L, H1)), const((1, H1)),                    # W_fc, b_fc
        const((H1, 2 * H2)), const((1, 2 * H2)),           # W_ab, b_ab (fused a|b)
        const((1, H2)), const((1, 1)),                     # w_c, b_c
        const((1, H1)), const((1, C1)),                    # w_coral, coral_bias
    ]
    out_specs = (
        pl.BlockSpec((None, 1, N), lambda b: (b, 0, 0)),   # A_raw
        pl.BlockSpec((None, 1, C1), lambda b: (b, 0, 0)),  # logits
        pl.BlockSpec((None, 1, C1), lambda b: (b, 0, 0)),  # Y_prob
        pl.BlockSpec((None, 1, 1), lambda b: (b, 0, 0)),   # Y_hat
    )
    out_shapes = (
        jax.ShapeDtypeStruct((B, 1, N), jnp.float32),
        jax.ShapeDtypeStruct((B, 1, C1), jnp.float32),
        jax.ShapeDtypeStruct((B, 1, C1), jnp.float32),
        jax.ShapeDtypeStruct((B, 1, 1), jnp.int32),
    )

    a_raw, logits, y_prob, y_hat = pl.pallas_call(
        braak_attention_kernel,
        grid=(B,),
        in_specs=in_specs,
        out_specs=out_specs,
        out_shape=out_shapes,
        compiler_params=pltpu.CompilerParams(dimension_semantics=("parallel",)),
    )(x, params["W_fc"], params["b_fc"], params["W_ab"], params["b_ab"],
      params["w_c"], params["b_c"], params["w_coral"], params["coral_bias"])

    if squeeze:
        return logits[0], y_prob[0], y_hat[0, :, 0], a_raw[0]
    return logits, y_prob, y_hat[..., 0], a_raw


def braak_reference(xb, params):
    """Pure-JAX f32 reference (same bf16-stored weights) for correctness checking."""
    W_fc = params["W_fc"].astype(jnp.float32)
    W_ab = params["W_ab"].astype(jnp.float32)
    H2 = params["w_c"].shape[1]

    def one_bag(x):
        h = jnp.maximum(x @ W_fc + params["b_fc"], 0.0)
        ab_pre = h @ W_ab + params["b_ab"]
        ab = jnp.tanh(ab_pre[:, :H2]) * jax.nn.sigmoid(ab_pre[:, H2:])
        a_raw = (ab @ params["w_c"].T + params["b_c"]).T            # (1, N)
        a_sm = jax.nn.softmax(a_raw, axis=1)
        M = a_sm @ h                                                # (1, H1)
        logits = M @ params["w_coral"].T + params["coral_bias"]     # (1, C-1)
        y_prob = jax.nn.sigmoid(logits)
        y_hat = jnp.sum((y_prob > 0.5).astype(jnp.int32), axis=1)
        return logits, y_prob, y_hat, a_raw

    return jax.vmap(one_bag)(xb)


def init_params(key, L, H1, H2, n_classes):
    """nn.Linear-style U(-1/sqrt(in), 1/sqrt(in)) init; big matmul weights cast to bf16."""
    def linear(k, fan_in, fan_out):
        bound = 1.0 / float(fan_in) ** 0.5
        kw, kb = jax.random.split(k)
        w = jax.random.uniform(kw, (fan_in, fan_out), jnp.float32, -bound, bound)
        b = jax.random.uniform(kb, (1, fan_out), jnp.float32, -bound, bound)
        return w, b

    k = jax.random.split(key, 5)
    W_fc, b_fc = linear(k[0], L, H1)
    W_a, b_a = linear(k[1], H1, H2)
    W_b, b_b = linear(k[2], H1, H2)
    W_c, b_c = linear(k[3], H2, 1)                       # attention_c: Linear(H2, 1)

    # fuse attention_a / attention_b projections into one matmul
    W_ab = jnp.concatenate([W_a, W_b], axis=1)           # (H1, 2*H2)
    b_ab = jnp.concatenate([b_a, b_b], axis=1)           # (1, 2*H2)

    # CoralLayer: Linear(H1, 1, bias=False) shared weight + preinit ordinal bias
    bound = 1.0 / float(H1) ** 0.5
    w_coral = jax.random.uniform(k[4], (1, H1), jnp.float32, -bound, bound)
    coral_bias = (jnp.arange(n_classes - 1, 0, -1, dtype=jnp.float32)
                  / float(n_classes - 1)).reshape(1, n_classes - 1)

    return {"W_fc": W_fc.astype(jnp.bfloat16), "b_fc": b_fc,
            "W_ab": W_ab.astype(jnp.bfloat16), "b_ab": b_ab,
            "w_c": W_c.reshape(1, H2), "b_c": b_c.reshape(1, 1),
            "w_coral": w_coral, "coral_bias": coral_bias}


if __name__ == "__main__":
    # BRAAK_attention(size='big') -> sizes [L, 512, 384], n_classes=5.
    # Small demo shapes: B=4 bags, N=64 instances per bag, L=256 features.
    B, N, L, H1, H2, n_classes = 4, 64, 256, 512, 384, 5

    key = jax.random.PRNGKey(0)
    k_param, k_x = jax.random.split(key)
    params = init_params(k_param, L, H1, H2, n_classes)
    x = jax.random.normal(k_x, (B, N, L), dtype=jnp.float32)

    logits, Y_prob, Y_hat, A_raw = jax.block_until_ready(braak_attention(x, params))

    assert logits.shape == (B, 1, n_classes - 1)
    assert Y_prob.shape == (B, 1, n_classes - 1)
    assert Y_hat.shape == (B, 1) and Y_hat.dtype == jnp.int32
    assert A_raw.shape == (B, 1, N)
    assert bool(jnp.all(jnp.isfinite(logits))) and bool(jnp.all(jnp.isfinite(A_raw)))

    # correctness vs. pure-JAX reference (tolerance covers the bf16 activation casts)
    ref_logits, ref_prob, ref_yhat, ref_araw = braak_reference(x, params)
    assert bool(jnp.allclose(logits, ref_logits, atol=5e-2, rtol=5e-2))
    assert bool(jnp.allclose(A_raw, ref_araw, atol=5e-2, rtol=5e-2))
    assert bool(jnp.allclose(Y_prob, ref_prob, atol=5e-2, rtol=5e-2))

    # single-bag path matches the PyTorch forward signature (x: (N, L))
    l1, p1, yh1, ar1 = jax.block_until_ready(braak_attention(x[0], params))
    assert l1.shape == (1, n_classes - 1) and yh1.shape == (1,) and ar1.shape == (1, N)

    print("KERNEL_OK")
</pallas_src>

<mosaic_0001>
module attributes {stable_mosaic.version = 11 : i64} {
  func.func @braak_attention_kernel(%arg0: i32, %arg1: memref<1x64x256xf32, #tpu.memory_space<vmem>>, %arg2: memref<256x512xbf16, #tpu.memory_space<vmem>>, %arg3: memref<1x512xf32, #tpu.memory_space<vmem>>, %arg4: memref<512x768xbf16, #tpu.memory_space<vmem>>, %arg5: memref<1x768xf32, #tpu.memory_space<vmem>>, %arg6: memref<1x384xf32, #tpu.memory_space<vmem>>, %arg7: memref<1x1xf32, #tpu.memory_space<vmem>>, %arg8: memref<1x512xf32, #tpu.memory_space<vmem>>, %arg9: memref<1x4xf32, #tpu.memory_space<vmem>>, %arg10: memref<1x1x64xf32, #tpu.memory_space<vmem>>, %arg11: memref<1x1x4xf32, #tpu.memory_space<vmem>>, %arg12: memref<1x1x4xf32, #tpu.memory_space<vmem>>, %arg13: memref<1x1x1xi32, #tpu.memory_space<vmem>>) attributes {dimension_semantics = [#tpu.dimension_semantics<parallel>], iteration_bounds = array<i64: 4>, scalar_prefetch = 0 : i64, scratch_operands = 0 : i64, tpu.core_type = #tpu.core_type<tc>, window_params = [{transform_indices = @transform_0, window_bounds = array<i64: 1, 64, 256>}, {pipeline_mode = #tpu.pipeline_mode<synchronous>, transform_indices = @transform_1, window_bounds = array<i64: 256, 512>}, {pipeline_mode = #tpu.pipeline_mode<synchronous>, transform_indices = @transform_2, window_bounds = array<i64: 1, 512>}, {pipeline_mode = #tpu.pipeline_mode<synchronous>, transform_indices = @transform_3, window_bounds = array<i64: 512, 768>}, {pipeline_mode = #tpu.pipeline_mode<synchronous>, transform_indices = @transform_4, window_bounds = array<i64: 1, 768>}, {pipeline_mode = #tpu.pipeline_mode<synchronous>, transform_indices = @transform_5, window_bounds = array<i64: 1, 384>}, {pipeline_mode = #tpu.pipeline_mode<synchronous>, transform_indices = @transform_6, window_bounds = array<i64: 1, 1>}, {pipeline_mode = #tpu.pipeline_mode<synchronous>, transform_indices = @transform_7, window_bounds = array<i64: 1, 512>}, {pipeline_mode = #tpu.pipeline_mode<synchronous>, transform_indices = @transform_8, window_bounds = array<i64: 1, 4>}, {transform_indices = @transform_9, window_bounds = array<i64: 1, 1, 64>}, {transform_indices = @transform_10, window_bounds = array<i64: 1, 1, 4>}, {transform_indices = @transform_11, window_bounds = array<i64: 1, 1, 4>}, {transform_indices = @transform_12, window_bounds = array<i64: 1, 1, 1>}]} {
    %c0 = arith.constant 0 : index
    %c0_0 = arith.constant 0 : index
    %c0_1 = arith.constant 0 : index
    %0 = vector.load %arg1[%c0, %c0_0, %c0_1] : memref<1x64x256xf32, #tpu.memory_space<vmem>>, vector<1x64x256xf32>
    %1 = vector.shape_cast %0 : vector<1x64x256xf32> to vector<64x256xf32>
    %2 = arith.truncf %1 : vector<64x256xf32> to vector<64x256xbf16>
    %c0_2 = arith.constant 0 : index
    %c0_3 = arith.constant 0 : index
    %3 = vector.load %arg2[%c0_2, %c0_3] : memref<256x512xbf16, #tpu.memory_space<vmem>>, vector<256x512xbf16>
    %cst = arith.constant dense<0.000000e+00> : vector<64x512xf32>
    %4 = tpu.matmul %2, %3, %cst {dimension_numbers = #tpu.dot_dimension_numbers<[1], [0], [0], [1], [0, 0, 1, 1], [], []>} : vector<64x256xbf16>, vector<256x512xbf16>, vector<64x512xf32> -> vector<64x512xf32>
    %c0_4 = arith.constant 0 : index
    %c0_5 = arith.constant 0 : index
    %5 = vector.load %arg3[%c0_4, %c0_5] : memref<1x512xf32, #tpu.memory_space<vmem>>, vector<1x512xf32>
    %6 = vector.broadcast %5 : vector<1x512xf32> to vector<64x512xf32>
    %7 = arith.addf %4, %6 : vector<64x512xf32>
    %cst_6 = arith.constant 0.000000e+00 : f32
    %8 = vector.broadcast %cst_6 : f32 to vector<64x512xf32>
    %9 = arith.maximumf %7, %8 : vector<64x512xf32>
    %10 = arith.truncf %9 : vector<64x512xf32> to vector<64x512xbf16>
    %c0_7 = arith.constant 0 : index
    %c0_8 = arith.constant 0 : index
    %11 = vector.load %arg4[%c0_7, %c0_8] : memref<512x768xbf16, #tpu.memory_space<vmem>>, vector<512x768xbf16>
    %cst_9 = arith.constant dense<0.000000e+00> : vector<64x768xf32>
    %12 = tpu.matmul %10, %11, %cst_9 {dimension_numbers = #tpu.dot_dimension_numbers<[1], [0], [0], [1], [0, 0, 1, 1], [], []>} : vector<64x512xbf16>, vector<512x768xbf16>, vector<64x768xf32> -> vector<64x768xf32>
    %c0_10 = arith.constant 0 : index
    %c0_11 = arith.constant 0 : index
    %13 = vector.load %arg5[%c0_10, %c0_11] : memref<1x768xf32, #tpu.memory_space<vmem>>, vector<1x768xf32>
    %14 = vector.broadcast %13 : vector<1x768xf32> to vector<64x768xf32>
    %15 = arith.addf %12, %14 : vector<64x768xf32>
    %16 = vector.extract_strided_slice %15 {offsets = [0, 0], sizes = [64, 384], strides = [1, 1]} : vector<64x768xf32> to vector<64x384xf32>
    %17 = math.tanh %16 : vector<64x384xf32>
    %18 = vector.extract_strided_slice %15 {offsets = [0, 384], sizes = [64, 384], strides = [1, 1]} : vector<64x768xf32> to vector<64x384xf32>
    %19 = arith.negf %18 : vector<64x384xf32>
    %20 = math.exp %19 : vector<64x384xf32>
    %cst_12 = arith.constant 1.000000e+00 : f32
    %21 = vector.broadcast %cst_12 : f32 to vector<64x384xf32>
    %22 = arith.addf %21, %20 : vector<64x384xf32>
    %23 = arith.divf %21, %22 : vector<64x384xf32>
    %24 = arith.mulf %17, %23 : vector<64x384xf32>
    %c0_13 = arith.constant 0 : index
    %c0_14 = arith.constant 0 : index
    %25 = vector.load %arg6[%c0_13, %c0_14] : memref<1x384xf32, #tpu.memory_space<vmem>>, vector<1x384xf32>
    %26 = arith.truncf %25 : vector<1x384xf32> to vector<1x384xbf16>
    %27 = arith.truncf %24 : vector<64x384xf32> to vector<64x384xbf16>
    %cst_15 = arith.constant dense<0.000000e+00> : vector<1x64xf32>
    %28 = tpu.matmul %26, %27, %cst_15 {dimension_numbers = #tpu.dot_dimension_numbers<[1], [1], [0], [0], [0, 0, 1, 0], [], []>} : vector<1x384xbf16>, vector<64x384xbf16>, vector<1x64xf32> -> vector<1x64xf32>
    %c0_16 = arith.constant 0 : index
    %c0_17 = arith.constant 0 : index
    %29 = vector.load %arg7[%c0_16, %c0_17] : memref<1x1xf32, #tpu.memory_space<vmem>>, vector<1x1xf32>
    %30 = vector.broadcast %29 : vector<1x1xf32> to vector<1x64xf32>
    %31 = arith.addf %28, %30 : vector<1x64xf32>
    %c0_18 = arith.constant 0 : index
    %c0_19 = arith.constant 0 : index
    %c0_20 = arith.constant 0 : index
    %32 = vector.load %arg10[%c0_18, %c0_19, %c0_20] : memref<1x1x64xf32, #tpu.memory_space<vmem>>, vector<1x1x64xf32>
    %33 = vector.shape_cast %32 : vector<1x1x64xf32> to vector<1x64xf32>
    %34 = vector.shape_cast %31 : vector<1x64xf32> to vector<1x1x64xf32>
    tpu.vector_store %arg10[%c0_18, %c0_19, %c0_20], %34 {strides = array<i32>} : memref<1x1x64xf32, #tpu.memory_space<vmem>>, vector<1x1x64xf32>,
    %cst_21 = arith.constant dense<0xFF800000> : vector<1xf32>
    %35 = vector.multi_reduction <maximumf>, %31, %cst_21 [1] : vector<1x64xf32> to vector<1xf32>
    %36 = vector.shape_cast %35 : vector<1xf32> to vector<1x1xf32>
    %37 = vector.broadcast %36 : vector<1x1xf32> to vector<1x64xf32>
    %38 = arith.subf %31, %37 : vector<1x64xf32>
    %39 = math.exp %38 : vector<1x64xf32>
    %cst_22 = arith.constant dense<0.000000e+00> : vector<1xf32>
    %40 = vector.multi_reduction <add>, %39, %cst_22 [1] : vector<1x64xf32> to vector<1xf32>
    %41 = vector.shape_cast %40 : vector<1xf32> to vector<1x1xf32>
    %42 = tpu.reciprocal %41 : vector<1x1xf32> -> vector<1x1xf32>
    %43 = vector.broadcast %42 : vector<1x1xf32> to vector<1x64xf32>
    %44 = arith.mulf %39, %43 : vector<1x64xf32>
    %45 = arith.truncf %44 : vector<1x64xf32> to vector<1x64xbf16>
    %cst_23 = arith.constant dense<0.000000e+00> : vector<1x512xf32>
    %46 = tpu.matmul %45, %10, %cst_23 {dimension_numbers = #tpu.dot_dimension_numbers<[1], [0], [0], [1], [0, 0, 1, 1], [], []>} : vector<1x64xbf16>, vector<64x512xbf16>, vector<1x512xf32> -> vector<1x512xf32>
    %c0_24 = arith.constant 0 : index
    %c0_25 = arith.constant 0 : index
    %47 = vector.load %arg8[%c0_24, %c0_25] : memref<1x512xf32, #tpu.memory_space<vmem>>, vector<1x512xf32>
    %48 = arith.mulf %46, %47 : vector<1x512xf32>
    %cst_26 = arith.constant dense<0.000000e+00> : vector<1xf32>
    %49 = vector.multi_reduction <add>, %48, %cst_26 [1] : vector<1x512xf32> to vector<1xf32>
    %50 = vector.shape_cast %49 : vector<1xf32> to vector<1x1xf32>
    %c0_27 = arith.constant 0 : index
    %c0_28 = arith.constant 0 : index
    %51 = vector.load %arg9[%c0_27, %c0_28] : memref<1x4xf32, #tpu.memory_space<vmem>>, vector<1x4xf32>
    %52 = vector.broadcast %50 : vector<1x1xf32> to vector<1x4xf32>
    %53 = arith.addf %52, %51 : vector<1x4xf32>
    %c0_29 = arith.constant 0 : index
    %c0_30 = arith.constant 0 : index
    %c0_31 = arith.constant 0 : index
    %54 = vector.load %arg11[%c0_29, %c0_30, %c0_31] : memref<1x1x4xf32, #tpu.memory_space<vmem>>, vector<1x1x4xf32>
    %55 = vector.shape_cast %54 : vector<1x1x4xf32> to vector<1x4xf32>
    %56 = vector.shape_cast %53 : vector<1x4xf32> to vector<1x1x4xf32>
    tpu.vector_store %arg11[%c0_29, %c0_30, %c0_31], %56 {strides = array<i32>} : memref<1x1x4xf32, #tpu.memory_space<vmem>>, vector<1x1x4xf32>,
    %57 = arith.negf %53 : vector<1x4xf32>
    %58 = math.exp %57 : vector<1x4xf32>
    %cst_32 = arith.constant 1.000000e+00 : f32
    %59 = vector.broadcast %cst_32 : f32 to vector<1x4xf32>
    %60 = arith.addf %59, %58 : vector<1x4xf32>
    %61 = arith.divf %59, %60 : vector<1x4xf32>
    %c0_33 = arith.constant 0 : index
    %c0_34 = arith.constant 0 : index
    %c0_35 = arith.constant 0 : index
    %62 = vector.load %arg12[%c0_33, %c0_34, %c0_35] : memref<1x1x4xf32, #tpu.memory_space<vmem>>, vector<1x1x4xf32>
    %63 = vector.shape_cast %62 : vector<1x1x4xf32> to vector<1x4xf32>
    %64 = vector.shape_cast %61 : vector<1x4xf32> to vector<1x1x4xf32>
    tpu.vector_store %arg12[%c0_33, %c0_34, %c0_35], %64 {strides = array<i32>} : memref<1x1x4xf32, #tpu.memory_space<vmem>>, vector<1x1x4xf32>,
    %cst_36 = arith.constant 5.000000e-01 : f32
    %65 = vector.broadcast %cst_36 : f32 to vector<1x4xf32>
    %66 = arith.cmpf ogt, %61, %65 : vector<1x4xf32>
    %67 = arith.extui %66 : vector<1x4xi1> to vector<1x4xi32>
    %cst_37 = arith.constant dense<0> : vector<1xi32>
    %68 = vector.multi_reduction <add>, %67, %cst_37 [1] : vector<1x4xi32> to vector<1xi32>
    %69 = vector.shape_cast %68 : vector<1xi32> to vector<1x1xi32>
    %c0_38 = arith.constant 0 : index
    %c0_39 = arith.constant 0 : index
    %c0_40 = arith.constant 0 : index
    %70 = vector.load %arg13[%c0_38, %c0_39, %c0_40] : memref<1x1x1xi32, #tpu.memory_space<vmem>>, vector<1x1x1xi32>
    %71 = vector.shape_cast %70 : vector<1x1x1xi32> to vector<1x1xi32>
    %72 = vector.shape_cast %69 : vector<1x1xi32> to vector<1x1x1xi32>
    tpu.vector_store %arg13[%c0_38, %c0_39, %c0_40], %72 {strides = array<i32>} : memref<1x1x1xi32, #tpu.memory_space<vmem>>, vector<1x1x1xi32>,
    return
  }
  func.func @transform_0(%arg0: i32) -> (i32, i32, i32) {
    %c0_i32 = arith.constant 0 : i32
    %c0_i32_0 = arith.constant 0 : i32
    %c0_i32_1 = arith.constant 0 : i32
    return %arg0, %c0_i32, %c0_i32_0 : i32, i32, i32
  }
  func.func @transform_1(%arg0: i32) -> (i32, i32) {
    %c0_i32 = arith.constant 0 : i32
    %c0_i32_0 = arith.constant 0 : i32
    %c0_i32_1 = arith.constant 0 : i32
    return %c0_i32, %c0_i32_0 : i32, i32
  }
  func.func @transform_2(%arg0: i32) -> (i32, i32) {
    %c0_i32 = arith.constant 0 : i32
    %c0_i32_0 = arith.constant 0 : i32
    %c0_i32_1 = arith.constant 0 : i32
    return %c0_i32, %c0_i32_0 : i32, i32
  }
  func.func @transform_3(%arg0: i32) -> (i32, i32) {
    %c0_i32 = arith.constant 0 : i32
    %c0_i32_0 = arith.constant 0 : i32
    %c0_i32_1 = arith.constant 0 : i32
    return %c0_i32, %c0_i32_0 : i32, i32
  }
  func.func @transform_4(%arg0: i32) -> (i32, i32) {
    %c0_i32 = arith.constant 0 : i32
    %c0_i32_0 = arith.constant 0 : i32
    %c0_i32_1 = arith.constant 0 : i32
    return %c0_i32, %c0_i32_0 : i32, i32
  }
  func.func @transform_5(%arg0: i32) -> (i32, i32) {
    %c0_i32 = arith.constant 0 : i32
    %c0_i32_0 = arith.constant 0 : i32
    %c0_i32_1 = arith.constant 0 : i32
    return %c0_i32, %c0_i32_0 : i32, i32
  }
  func.func @transform_6(%arg0: i32) -> (i32, i32) {
    %c0_i32 = arith.constant 0 : i32
    %c0_i32_0 = arith.constant 0 : i32
    %c0_i32_1 = arith.constant 0 : i32
    return %c0_i32, %c0_i32_0 : i32, i32
  }
  func.func @transform_7(%arg0: i32) -> (i32, i32) {
    %c0_i32 = arith.constant 0 : i32
    %c0_i32_0 = arith.constant 0 : i32
    %c0_i32_1 = arith.constant 0 : i32
    return %c0_i32, %c0_i32_0 : i32, i32
  }
  func.func @transform_8(%arg0: i32) -> (i32, i32) {
    %c0_i32 = arith.constant 0 : i32
    %c0_i32_0 = arith.constant 0 : i32
    %c0_i32_1 = arith.constant 0 : i32
    return %c0_i32, %c0_i32_0 : i32, i32
  }
  func.func @transform_9(%arg0: i32) -> (i32, i32, i32) {
    %c0_i32 = arith.constant 0 : i32
    %c0_i32_0 = arith.constant 0 : i32
    %c0_i32_1 = arith.constant 0 : i32
    return %arg0, %c0_i32, %c0_i32_0 : i32, i32, i32
  }
  func.func @transform_10(%arg0: i32) -> (i32, i32, i32) {
    %c0_i32 = arith.constant 0 : i32
    %c0_i32_0 = arith.constant 0 : i32
    %c0_i32_1 = arith.constant 0 : i32
    return %arg0, %c0_i32, %c0_i32_0 : i32, i32, i32
  }
  func.func @transform_11(%arg0: i32) -> (i32, i32, i32) {
    %c0_i32 = arith.constant 0 : i32
    %c0_i32_0 = arith.constant 0 : i32
    %c0_i32_1 = arith.constant 0 : i32
    return %arg0, %c0_i32, %c0_i32_0 : i32, i32, i32
  }
  func.func @transform_12(%arg0: i32) -> (i32, i32, i32) {
    %c0_i32 = arith.constant 0 : i32
    %c0_i32_0 = arith.constant 0 : i32
    %c0_i32_1 = arith.constant 0 : i32
    return %arg0, %c0_i32, %c0_i32_0 : i32, i32, i32
  }
}

</mosaic_0001>

<bundles_post_ra>
// kernel: tpu_custom_call.1
= control target key start
LH: loop header
LB: loop body
LE: loop exit
PB: predicated region body
PF: predicated region fallthrough
CT: control target
= control target key end

     0   :  { %s5510_s0 = inlined_call_operand.hbm [shape: f32[4,64,256], index: 0, kind: input, shape index: {}]   ;;  %s5511_s1 = inlined_call_operand.hbm [shape: bf16[256,512], index: 1, kind: input, shape index: {}]   ;;  %s5512_s2 = inlined_call_operand.vmem [shape: f32[1,512], index: 2, kind: input, shape index: {}]   ;;  %s5513_s3 = inlined_call_operand.hbm [shape: bf16[512,768], index: 3, kind: input, shape index: {}]   ;;  %s5514_s4 = inlined_call_operand.vmem [shape: f32[1,768], index: 4, kind: input, shape index: {}]   ;;  %s5515_s5 = inlined_call_operand.vmem [shape: f32[1,384], index: 5, kind: input, shape index: {}]   ;;  %s5516_s6 = inlined_call_operand.<no memory space> [shape: f32[1,1], index: 6, kind: input, shape index: {}]   ;;  %s5517_s7 = inlined_call_operand.vmem [shape: f32[1,512], index: 7, kind: input, shape index: {}]   ;;  %s5518_s8 = inlined_call_operand.vmem [shape: f32[1,4], index: 8, kind: input, shape index: {}]   ;;  %s5519_s9 = inlined_call_operand.hbm [shape: f32[4,1,64], index: 9, kind: output, shape index: {0}]   ;;  %s5520_s10 = inlined_call_operand.hbm [shape: f32[4,1,4], index: 10, kind: output, shape index: {1}]   ;;  %s5521_s11 = inlined_call_operand.hbm [shape: f32[4,1,4], index: 11, kind: output, shape index: {2}]   ;;  %s5522_s12 = inlined_call_operand.vmem [shape: s32[4,1,1], index: 12, kind: output, shape index: {3}]  }
   0x1   :  { %5538 = sst [smem:[#allocation22_spill]] %s5510_s0  ;;  %v18_v0 = vstv %s5516_s6 }
   0x2   :  { %5539 = sst [smem:[#allocation23_spill]] %s5511_s1  ;;  %19 = vst [vmem:[#allocation2] sm:$0x1] %v18_v0 }
   0x3   :  { %5540 = sst [smem:[#allocation24_spill]] %s5522_s12 }
   0x4   :  { %20 = vsyncpa [#allocation4], 0 }
   0x5   :  { %22 = vsyncpa [#allocation4 + $0x1], 0 }
   0x6   :  { %23 = vsyncpa [#allocation7], 0 }
   0x7   :  { %24 = vsyncpa [#allocation5], 0 }
   0x8   :  { %26 = vsyncpa [#allocation5 + $0x1], 0 }
   0x9   :  { %27 = vsyncpa [#allocation11], 0 }
   0xa   :  { %29 = vsyncpa [#allocation11 + $0x1], 0  ;;  %s4760_s23 = smov 0   ;;  %s4762_s24 = smov 0  }
   0xb   :  { %s4764_s25 = smov 0   ;;  %s4766_s26 = smov 0  }
   0xc LB: > { %5541 = sst [smem:[#allocation17_spill]] %s4665_s23  ;;  %s4781_s6 = sadd.s32 4294967295, %s4677_s26   ;;  %s4677_s26 = sphi %s4766_s26, %s5579_s26   ;;  %s4673_s25 = sphi %s4764_s25, %s5578_s25   ;;  %s4669_s24 = sphi %s4762_s24, %s5577_s24   ;;  %s4665_s23 = sphi %s4760_s23, %s5576_s23  }
   0xd   : > { %s5523_s27 = sadd.s32 4294967294, %s4677_s26   ;;  %p55_p0 = scmp.ne.s32.totalorder %s4669_s24, %s4665_s23 }
   0xe   : > { %p5524_p1 = scmp.eq.s32.totalorder %s4781_s6, 0  ;;  %p253_p3 = scmp.eq.s32.totalorder %s5523_s27, 3 }
   0xf   : > { %p3422_p5 = scmp.ge.s32.totalorder %s4677_s26, 1  ;;  %p338_p7 = scmp.lt.s32.totalorder %s4677_s26, 5 }
  0x10   : > { %p4792_p4 = por %p5524_p1, %p55_p0  ;;  %p4797_p6 = por %p253_p3, %p55_p0 }
  0x11   : > { %p4802_p8 = pnand %p3422_p5, %p338_p7  ;;  %s4679_s13 = smov [#allocation6]  }
  0x12   : > { %s5542_s28 = scalar_select %p4792_p4, 1, 0 }
  0x13   : > { %s5543_s29 = scalar_select %p4797_p6, 1, 0 }
  0x14   : > { %s5545_s30 = scalar_select %p4802_p8, 1, 0 }
  0x15   : > { %5544 = sst [smem:[#allocation18_spill]] %s5543_s29  ;;  %s350_s14 = sshll.u32 %s4679_s13, 4  ;;  %s351_s14 = int_to_ptr.vmem [resolvable:$true] %s350_s14 }
  0x16   : > { %p3856_p9 = pneg %p4802_p8  ;;  %s4680_s16 = smov [#allocation8]  }
  0x17   : > { %s366_s17 = sshll.u32 %s4680_s16, 4  ;;  %s5547_s1 = sld [smem:[#allocation23_spill]]  ;;  %s4814_s17 = int_to_ptr.vmem [resolvable:$true] %s366_s17 }
  0x18   : > { %p4810_p10 = pnand %p3856_p9, %p5524_p1 }
  0x1a   : > { %p4463_p12 = pneg %p4810_p10 }
  0x1d   : > { %s4461_s20 = scalar_lea.hbm %s5547_s1, 8192 }
  0x1e   : > { %p4462_p11 = scmp.ne.s32.totalorder %s5547_s1, %s4461_s20  ;;  %p4468_p3 = scmp.lt.u32.totalorder %s4461_s20, %s5547_s1 }
  0x20   : > { %p4464_p13 = pnand %p4463_p12, %p4462_p11 }
  0x22   : > { %p4465_p0 = pneg %p4464_p13 }
  0x24   : > { %p4470_p5 = pnand %p4468_p3, %p4465_p0 }
  0x26   : > { %4473 = shalt.err (!%p4470_p5)
}
  0x27   : > { %s4474_s16 = scalar_lea.vmem %s351_s14, 8192  ;;  %p4482_p2 = scmp.lt.s32.totalorder %s351_s14, %s351_s14 }
  0x28   : > { %p4475_p7 = scmp.ne.s32.totalorder %s351_s14, %s4474_s16  ;;  %p4483_p6 = scmp.lt.s32.totalorder %s4474_s16, %s4474_s16 }
  0x2a   : > { %p4477_p9 = pnand %p4475_p7, %p4463_p12  ;;  %p4484_p4 = por %p4483_p6, %p4482_p2 }
  0x2c   : > { %p4478_p1 = pneg %p4477_p9 }
  0x2e   : > { %p4485_p8 = pnand %p4484_p4, %p4478_p1 }
  0x30   : > { %4488 = shalt.err (!%p4485_p8)
}
  0x31   : > { %s5529_s18 = smov 256   ;;  %s5530_s19 = smov 16  }
  0x32   : > { %3859 = dma.hbm_to_vmem [thread:$0]  (!%p4810_p10), %s5547_s1, 8192, %s351_s14, [#allocation7], %s5529_s18, %s5529_s18, %s5530_s19  }
  0x33   : > { %s4489_s13 = scalar_lea.hbm %s5513_s3, 24576 }
  0x34   : > { %p4490_p1 = scmp.ne.s32.totalorder %s5513_s3, %s4489_s13  ;;  %p4496_p6 = scmp.lt.u32.totalorder %s4489_s13, %s5513_s3 }
  0x36   : > { %p4492_p2 = pnand %p4490_p1, %p4463_p12 }
  0x38   : > { %p4493_p4 = pneg %p4492_p2 }
  0x3a   : > { %p4498_p8 = pnand %p4496_p6, %p4493_p4 }
  0x3c   : > { %4501 = shalt.err (!%p4498_p8)
}
  0x3d   : > { %s4502_s14 = scalar_lea.vmem %s4814_s17, 24576  ;;  %p4510_p3 = scmp.lt.s32.totalorder %s4814_s17, %s4814_s17 }
  0x3e   : > { %p4503_p11 = scmp.ne.s32.totalorder %s4814_s17, %s4502_s14  ;;  %p4511_p5 = scmp.lt.s32.totalorder %s4502_s14, %s4502_s14 }
  0x40   : > { %p4505_p13 = pnand %p4503_p11, %p4463_p12  ;;  %p4512_p7 = por %p4511_p5, %p4510_p3 }
  0x42   : > { %p4506_p0 = pneg %p4505_p13 }
  0x44   : > { %p4513_p9 = pnand %p4512_p7, %p4506_p0 }
  0x46   : > { %4516 = shalt.err (!%p4513_p9)
}
  0x47   : > { %s4683_s12 = smov 384   ;;  %s4684_s23 = smov 24  }
  0x48   : > { %3862 = dma.hbm_to_vmem [thread:$0]  (!%p4810_p10), %s5513_s3, 24576, %s4814_s17, [#allocation7], %s4683_s12, %s4683_s12, %s4684_s23  }
  0x49   : > { %s4867_s20 = sadd.s32 1, %s4677_s26   ;;  %s42_s22 = sadd.s32 1, %s4673_s25 }
  0x4a   : > { %s39_s21 = ssub.s32 %s4677_s26, %s4867_s20  ;;  %p49_p1 = scmp.ne.s32.totalorder %s4673_s25, %s4669_s24 }
  0x4b   : > { %p40_p12 = scmp.eq.s32.totalorder %s39_s21, 0  ;;  %p50_p2 = scmp.eq.s32.totalorder %s4677_s26, 0 }
  0x4c   : > { %p5548_p6 = scmp.eq.s32.totalorder %s4781_s6, 3  ;;  %p3879_p11 = scmp.lt.s32.totalorder %s4677_s26, 4 }
  0x4d   : > { %s4876_s13 = scalar_select %p40_p12, %s4673_s25, %s42_s22  }
  0x4e   : > { %p51_p4 = por %p50_p2, %p49_p1  ;;  %p4880_p8 = por %p5548_p6, %p49_p1 }
  0x4f   : > { %s395_s15 = sand.u32 1, %s4673_s25   ;;  %s3721_s17 = sshll.u32 %s4677_s26, 11 }
  0x50   : > { %s3426_s14 = sshll.u32 %s395_s15, 7  ;;  %s5550_s0 = sld [smem:[#allocation22_spill]] }
  0x51   : > { %s399_s27 = scalar_lea.vmem [#allocation3], %s3426_s14  ;;  %p4894_p10 = pnand %p3879_p11, %p51_p4 }
  0x52   : > { %s406_s21 = sshll.u32 %s399_s27, 4  ;;  %s4898_s18 = scalar_lea.sflag [#allocation4], %s395_s15  ;;  %s4892_s21 = int_to_ptr.vmem [resolvable:$true] %s406_s21 }
  0x53   : > { %p4519_p0 = pneg %p4894_p10 }
  0x56   : > { %s4890_s29 = scalar_lea.hbm %s5550_s0, %s3721_s17  ;;  %s4522_s12 = scalar_lea.hbm %s5550_s0, 8192 }
  0x57   : > { %s4517_s19 = scalar_lea.hbm %s4890_s29, 2048  ;;  %p4523_p7 = scmp.lt.u32.totalorder %s4890_s29, %s5550_s0 }
  0x58   : > { %p4518_p13 = scmp.ne.s32.totalorder %s4890_s29, %s4517_s19  ;;  %p4524_p9 = scmp.lt.u32.totalorder %s4522_s12, %s4517_s19 }
  0x59   : > { %p4526_p1 = scmp.lt.u32.totalorder %s4517_s19, %s4890_s29 }
  0x5a   : > { %p4520_p3 = pnand %p4519_p0, %p4518_p13  ;;  %p4525_p12 = por %p4524_p9, %p4523_p7 }
  0x5c   : > { %p4521_p5 = pneg %p4520_p3  ;;  %p4527_p2 = por %p4526_p1, %p4525_p12 }
  0x5e   : > { %p4528_p4 = pnand %p4527_p2, %p4521_p5 }
  0x60   : > { %4531 = shalt.err (!%p4528_p4)
}
  0x61   : > { %s4532_s15 = scalar_lea.vmem %s4892_s21, 2048  ;;  %s4685_s14 = smov [#allocation3]  }
  0x62   : > { %p4533_p6 = scmp.ne.s32.totalorder %s4892_s21, %s4532_s15  ;;  %s4537_s17 = sshll.u32 %s4685_s14, 4  ;;  %s4538_s17 = int_to_ptr.vmem [resolvable:$false] %s4537_s17 }
  0x63   : > { %s4539_s23 = scalar_lea.vmem %s4538_s17, 4096  ;;  %p4540_p3 = scmp.lt.s32.totalorder %s4892_s21, %s4538_s17 }
  0x64   : > { %p4535_p11 = pnand %p4533_p6, %p4519_p0  ;;  %p4541_p7 = scmp.lt.s32.totalorder %s4539_s23, %s4532_s15 }
  0x66   : > { %p4536_p13 = pneg %p4535_p11  ;;  %p4542_p9 = por %p4541_p7, %p4540_p3 }
  0x68   : > { %p4543_p12 = pnand %p4542_p9, %p4536_p13 }
  0x6a   : > { %4546 = shalt.err (!%p4543_p12)
}
  0x6b   : > { %s5552_s19 = smov 16   ;;  %s5553_s12 = smov 256  }
  0x6c   : > { %3866 = dma.hbm_to_vmem [thread:$0]  (!%p4894_p10), %s4890_s29, 2048, %s4892_s21, %s4898_s18, %s5553_s12, %s5553_s12, %s5552_s19  }
  0x6d   : > { %p5554_p0 = scmp.ne.s32.totalorder %s5545_s30, 0 }
  0x6f   : > { %418 = sbr.rel (%p5554_p0) target bundleno = 2008 (0x7d8), region = 56 }
  0x76   : > { %s4932_s27 = sand.u32 1, %s4669_s24   ;;  %p5555_p5 = scmp.ne.s32.totalorder %s5542_s28, 0 }
  0x77   : > { %s3430_s15 = sshll.u32 %s4932_s27, 7  ;;  %s421_s14 = scalar_lea.sflag [#allocation4], %s4932_s27 }
  0x78   : > { %s4936_s17 = scalar_lea.vmem [#allocation3], %s3430_s15 }
  0x79   : > { %4648 = dma.done.wait (%p5555_p5), %s421_s14, 2048  }
  0x7a   : > { %4650 = vsyncadd (%p5555_p5), %s421_s14, 4294965248  ;;  %p5556_p10 = scmp.eq.s32.totalorder %s4781_s6, 0 }
  0x7c   : > { %4652 = dma.done.wait (%p5556_p10), [#allocation7], 32768   ;;  %p5557_p1 = pmov %p5556_p10 }
  0x7d   : > { %v3925_v1 = vld [vmem:[#allocation6 + $0x4] ss:$16 sps:$4 sm:$0xff]   ;;  %v3927_v2 = vld [vmem:[#allocation6] ss:$16 sps:$4 sm:$0xff]   ;;  %v3973_v14 = vld [vmem:[#allocation6 + $0xc] ss:$16 sps:$4 sm:$0xff]  }
  0x7e   : > { %4654 = vsyncadd (%p5557_p1), [#allocation7], 4294934528  ;;  %917 = vmatprep.subr.bf16.mxu0 %v3925_v1  ;;  %v3928_v3 = vld [vmem:[#allocation6 + $0x24] ss:$16 sps:$4 sm:$0xff]   ;;  %v3930_v4 = vld [vmem:[#allocation6 + $0x20] ss:$16 sps:$4 sm:$0xff]   ;;  %990 = vmatprep.subr.bf16.mxu1 %v3973_v14 }
  0x7f   : > { %918 = vmatpush1.bf16.msra.mxu0 %v3927_v2  ;;  %v3931_v5 = vld [vmem:[#allocation6 + $0x44] ss:$16 sps:$4 sm:$0xff]   ;;  %v3933_v6 = vld [vmem:[#allocation6 + $0x40] ss:$16 sps:$4 sm:$0xff]   ;;  %v3975_v15 = vld [vmem:[#allocation6 + $0x8] ss:$16 sps:$4 sm:$0xff]  }
  0x80   : > { %919 = vmatprep.subr.bf16.mxu0 %v3928_v3  ;;  %v3934_v7 = vld [vmem:[#allocation6 + $0x64] ss:$16 sps:$4 sm:$0xff]   ;;  %v3936_v8 = vld [vmem:[#allocation6 + $0x60] ss:$16 sps:$4 sm:$0xff]   ;;  %v488_v16 = vld [vmem:[%s4936_s17 + $0x8] sm:$0xff]  ;;  %991 = vmatpush1.bf16.msra.mxu1 %v3975_v15  ;;  %vm4688_vm0 = vmmov 0  }
  0x81   : > { %v3937_v9 = vld [vmem:[#allocation6 + $0x84] ss:$16 sps:$4 sm:$0xff]   ;;  %v3939_v10 = vld [vmem:[#allocation6 + $0x80] ss:$16 sps:$4 sm:$0xff]   ;;  %v490_v19 = vld [vmem:[%s4936_s17 + $0x18] sm:$0xff]  ;;  %vm3047_vm1 = vcmask 516096  }
  0x82   : > { %v3940_v11 = vld [vmem:[#allocation6 + $0xa4] ss:$16 sps:$4 sm:$0xff]   ;;  %v3942_v12 = vld [vmem:[#allocation6 + $0xa0] ss:$16 sps:$4 sm:$0xff]   ;;  %v504_v20 = vpack.c.bf16 %v490_v19, %v488_v16  ;;  %v3976_v21 = vld [vmem:[#allocation6 + $0x2c] ss:$16 sps:$4 sm:$0xff]  }
  0x83   : > { %920 = vmatpush1.bf16.msra.mxu0 %v3930_v4  ;;  %v3943_v13 = vld [vmem:[#allocation6 + $0xc4] ss:$16 sps:$4 sm:$0xff]   ;;  %v3945_v17 = vld [vmem:[#allocation6 + $0xc0] ss:$16 sps:$4 sm:$0xff]   ;;  %v3978_v22 = vld [vmem:[#allocation6 + $0x28] ss:$16 sps:$4 sm:$0xff]   ;;  %992 = vmatprep.subr.bf16.mxu1 %v3976_v21 }
  0x84   : > { %921 = vmatprep.subr.bf16.mxu0 %v3931_v5  ;;  %v3946_v18 = vld [vmem:[#allocation6 + $0xe4] ss:$16 sps:$4 sm:$0xff]   ;;  %949 = vmatprep.mubr.bf16.mxu0 %v504_v20  ;;  %v3979_v23 = vld [vmem:[#allocation6 + $0x4c] ss:$16 sps:$4 sm:$0xff]   ;;  %v3948_v24 = vld [vmem:[#allocation6 + $0xe0] ss:$16 sps:$4 sm:$0xff]  }
  0x85   : > { %1022 = vmatprep.mubr.bf16.mxu1 %v504_v20  ;;  %v3949_v25 = vld [vmem:[#allocation6 + $0x104] ss:$16 sps:$4 sm:$0xff]   ;;  %993 = vmatpush1.bf16.msra.mxu1 %v3978_v22  ;;  %v3981_v26 = vld [vmem:[#allocation6 + $0x48] ss:$16 sps:$4 sm:$0xff]   ;;  %v3982_v27 = vld [vmem:[#allocation6 + $0x6c] ss:$16 sps:$4 sm:$0xff]  }
  0x86   : > { %994 = vmatprep.subr.bf16.mxu1 %v3979_v23  ;;  %v3951_v28 = vld [vmem:[#allocation6 + $0x100] ss:$16 sps:$4 sm:$0xff]   ;;  %v3952_v29 = vld [vmem:[#allocation6 + $0x124] ss:$16 sps:$4 sm:$0xff]   ;;  %v3984_v30 = vld [vmem:[#allocation6 + $0x68] ss:$16 sps:$4 sm:$0xff]  }
  0x87   : > { %922 = vmatpush1.bf16.msra.mxu0 %v3933_v6  ;;  %v3985_v31 = vld [vmem:[#allocation6 + $0x8c] ss:$16 sps:$4 sm:$0xff]   ;;  %v3954_v32 = vld [vmem:[#allocation6 + $0x120] ss:$16 sps:$4 sm:$0xff]   ;;  %v3955_v33 = vld [vmem:[#allocation6 + $0x144] ss:$16 sps:$4 sm:$0xff]  }
  0x88   : > { %923 = vmatprep.subr.bf16.mxu0 %v3934_v7  ;;  %v3987_v34 = vld [vmem:[#allocation6 + $0x88] ss:$16 sps:$4 sm:$0xff]   ;;  %v3988_v35 = vld [vmem:[#allocation6 + $0xac] ss:$16 sps:$4 sm:$0xff]   ;;  %v3957_v36 = vld [vmem:[#allocation6 + $0x140] ss:$16 sps:$4 sm:$0xff]  }
  0x89   : > { %995 = vmatpush1.bf16.msra.mxu1 %v3981_v26  ;;  %v3958_v37 = vld [vmem:[#allocation6 + $0x164] ss:$16 sps:$4 sm:$0xff]   ;;  %v3990_v38 = vld [vmem:[#allocation6 + $0xa8] ss:$16 sps:$4 sm:$0xff]   ;;  %v3991_v39 = vld [vmem:[#allocation6 + $0xcc] ss:$16 sps:$4 sm:$0xff]  }
  0x8a   : > { %996 = vmatprep.subr.bf16.mxu1 %v3982_v27  ;;  %v3960_v40 = vld [vmem:[#allocation6 + $0x160] ss:$16 sps:$4 sm:$0xff]   ;;  %v3961_v41 = vld [vmem:[#allocation6 + $0x184] ss:$16 sps:$4 sm:$0xff]   ;;  %v3993_v42 = vld [vmem:[#allocation6 + $0xc8] ss:$16 sps:$4 sm:$0xff]  }
  0x8b   : > { %924 = vmatpush1.bf16.msra.mxu0 %v3936_v8  ;;  %v3994_v43 = vld [vmem:[#allocation6 + $0xec] ss:$16 sps:$4 sm:$0xff]   ;;  %v3963_v44 = vld [vmem:[#allocation6 + $0x180] ss:$16 sps:$4 sm:$0xff]   ;;  %v3964_v45 = vld [vmem:[#allocation6 + $0x1a4] ss:$16 sps:$4 sm:$0xff]  }
  0x8c   : > { %925 = vmatprep.subr.bf16.mxu0 %v3937_v9  ;;  %v3996_v46 = vld [vmem:[#allocation6 + $0xe8] ss:$16 sps:$4 sm:$0xff]   ;;  %v3997_v47 = vld [vmem:[#allocation6 + $0x10c] ss:$16 sps:$4 sm:$0xff]   ;;  %v3966_v48 = vld [vmem:[#allocation6 + $0x1a0] ss:$16 sps:$4 sm:$0xff]  }
  0x8d   : > { %997 = vmatpush1.bf16.msra.mxu1 %v3984_v30  ;;  %v3967_v49 = vld [vmem:[#allocation6 + $0x1c4] ss:$16 sps:$4 sm:$0xff]   ;;  %v3999_v50 = vld [vmem:[#allocation6 + $0x108] ss:$16 sps:$4 sm:$0xff]   ;;  %v4000_v51 = vld [vmem:[#allocation6 + $0x12c] ss:$16 sps:$4 sm:$0xff]  }
  0x8e   : > { %998 = vmatprep.subr.bf16.mxu1 %v3985_v31  ;;  %v3969_v52 = vld [vmem:[#allocation6 + $0x1c0] ss:$16 sps:$4 sm:$0xff]   ;;  %v3970_v53 = vld [vmem:[#allocation6 + $0x1e4] ss:$16 sps:$4 sm:$0xff]   ;;  %v4002_v56 = vld [vmem:[#allocation6 + $0x128] ss:$16 sps:$4 sm:$0xff]  }
  0x8f   : > { %926 = vmatpush1.bf16.msra.mxu0 %v3939_v10  ;;  %v3972_v54 = vld [vmem:[#allocation6 + $0x1e0] ss:$16 sps:$4 sm:$0xff]   ;;  %v4003_v58 = vld [vmem:[#allocation6 + $0x14c] ss:$16 sps:$4 sm:$0xff]   ;;  %v4005_v62 = vld [vmem:[#allocation6 + $0x148] ss:$16 sps:$4 sm:$0xff]  }
  0x90   : > { %927 = vmatprep.subr.bf16.mxu0 %v3940_v11  ;;  %v487_v55 = vld [vmem:[%s4936_s17] sm:$0xff]  ;;  %v489_v57 = vld [vmem:[%s4936_s17 + $0x10] sm:$0xff]  ;;  %v492_v59 = vld [vmem:[%s4936_s17 + $0x28] sm:$0xff]  ;;  %s5537_s23 = scalar_lea.vmem [#allocation9], %s4932_s27  ;;  %vm3061_vm2 = vcmask 523264   ;;  %vm3173_vm3 = vcmask 1040384  }
  0x91   : > { %999 = vmatpush1.bf16.msra.mxu1 %v3987_v34  ;;  %v494_v60 = vld [vmem:[%s4936_s17 + $0x38] sm:$0xff]  ;;  %v4952_v63 = vpack.c.bf16 %v489_v57, %v487_v55  ;;  %v4029_v3 = vld [vmem:[#allocation8 + $0x34] ss:$24 sps:$4 sm:$0xff]   ;;  %v491_v4 = vld [vmem:[%s4936_s17 + $0x20] sm:$0xff]  ;;  %vm3185_vm4 = vcmask 24576   ;;  %s5536_s28 = scalar_lea.vmem [#allocation12], %s4932_s27 }
  0x92   : > { %1000 = vmatprep.subr.bf16.mxu1 %v3988_v35  ;;  %v4023_v61 = vld [vmem:[#allocation8 + $0x4] ss:$24 sps:$4 sm:$0xff]   ;;  %v4954_v1 = vpack.c.bf16 %v494_v60, %v492_v59  ;;  %v4021_v2 = vld [vmem:[#allocation8] ss:$24 sps:$4 sm:$0xff]   ;;  %v493_v5 = vld [vmem:[%s4936_s17 + $0x30] sm:$0xff]  ;;  %s3215_s30 = sand.u32 1, %s4781_s6  }
  0x93   : > { %928 = vmatpush1.bf16.msra.mxu0 %v3942_v12  ;;  %v4006_v0 = vld [vmem:[#allocation6 + $0x16c] ss:$16 sps:$4 sm:$0xff]   ;;  %v4008_v6 = vld [vmem:[#allocation6 + $0x168] ss:$16 sps:$4 sm:$0xff]   ;;  %v497_v19 = vld [vmem:[%s4936_s17 + $0x50] sm:$0xff]  ;;  %s5391_s18 = sshll.u32 %s4781_s6, 4 }
  0x94   : > { %929 = vmatprep.subr.bf16.mxu0 %v3943_v13  ;;  %v496_v7 = vld [vmem:[%s4936_s17 + $0x48] sm:$0xff]  ;;  %v498_v9 = vld [vmem:[%s4936_s17 + $0x58] sm:$0xff]  ;;  %v4962_v13 = vpack.c.bf16 %v493_v5, %v491_v4  ;;  %v501_v34 = vld [vmem:[%s4936_s17 + $0x70] sm:$0xff]  ;;  %s5397_s22 = scalar_lea.hbm %s5520_s10, %s5391_s18  ;;  %s5405_s14 = scalar_lea.hbm %s5519_s9, %s5391_s18 }
  0x95   : > { %1001 = vmatpush1.bf16.msra.mxu1 %v3990_v38  ;;  %v4009_v8 = vld [vmem:[#allocation6 + $0x18c] ss:$16 sps:$4 sm:$0xff]   ;;  %v4027_v10 = vld [vmem:[#allocation8 + $0x30] ss:$24 sps:$4 sm:$0xff]   ;;  %v4964_v15 = vpack.c.bf16 %v498_v9, %v496_v7  ;;  %v4033_v16 = vld [vmem:[#allocation8 + $0x60] ss:$24 sps:$4 sm:$0xff]  }
  0x96   : > { %1002 = vmatprep.subr.bf16.mxu1 %v3991_v39  ;;  %v4035_v11 = vld [vmem:[#allocation8 + $0x64] ss:$24 sps:$4 sm:$0xff]   ;;  %v4011_v12 = vld [vmem:[#allocation6 + $0x188] ss:$16 sps:$4 sm:$0xff]   ;;  %v4053_v31 = vld [vmem:[#allocation8 + $0xf4] ss:$24 sps:$4 sm:$0xff]  }
  0x97   : > { %930 = vmatpush1.bf16.msra.mxu0 %v3945_v17  ;;  %v4012_v14 = vld [vmem:[#allocation6 + $0x1ac] ss:$16 sps:$4 sm:$0xff]   ;;  %v4014_v20 = vld [vmem:[#allocation6 + $0x1a8] ss:$16 sps:$4 sm:$0xff]   ;;  %s4689_s29 = smov [#allocation10]  }
  0x98   : > { %931 = vmatprep.subr.bf16.mxu0 %v3946_v18  ;;  %v4041_v17 = vld [vmem:[#allocation8 + $0x94] ss:$24 sps:$4 sm:$0xff]   ;;  %v495_v18 = vld [vmem:[%s4936_s17 + $0x40] sm:$0xff]  ;;  %v502_v23 = vld [vmem:[%s4936_s17 + $0x78] sm:$0xff]  ;;  %s4551_s21 = sshll.u32 %s4689_s29, 4  ;;  %s4552_s21 = int_to_ptr.vmem [resolvable:$false] %s4551_s21 }
  0x99   : > { %1003 = vmatpush1.bf16.msra.mxu1 %v3993_v42  ;;  %v500_v21 = vld [vmem:[%s4936_s17 + $0x68] sm:$0xff]  ;;  %v4972_v27 = vpack.c.bf16 %v497_v19, %v495_v18  ;;  %v4045_v30 = vld [vmem:[#allocation8 + $0xc0] ss:$24 sps:$4 sm:$0xff]   ;;  %v4059_v38 = vld [vmem:[#allocation8 + $0x124] ss:$24 sps:$4 sm:$0xff]  }
  0x9a   : > { %1004 = vmatprep.subr.bf16.mxu1 %v3994_v43  ;;  %v4015_v22 = vld [vmem:[#allocation6 + $0x1cc] ss:$16 sps:$4 sm:$0xff]   ;;  %v4017_v26 = vld [vmem:[#allocation6 + $0x1c8] ss:$16 sps:$4 sm:$0xff]  }
  0x9b   : > { %932 = vmatpush1.bf16.msra.mxu0 %v3948_v24  ;;  %v4039_v24 = vld [vmem:[#allocation8 + $0x90] ss:$24 sps:$4 sm:$0xff]   ;;  %v4026_v35 = vld [vmem:[#allocation8 + $0xc] ss:$24 sps:$4 sm:$0xff]   ;;  %v4032_v39 = vld [vmem:[#allocation8 + $0x3c] ss:$24 sps:$4 sm:$0xff]  }
  0x9c   : > { %933 = vmatprep.subr.bf16.mxu0 %v3949_v25  ;;  %v4047_v25 = vld [vmem:[#allocation8 + $0xc4] ss:$24 sps:$4 sm:$0xff]   ;;  %v4065_v42 = vld [vmem:[#allocation8 + $0x154] ss:$24 sps:$4 sm:$0xff]   ;;  %v4030_v43 = vld [vmem:[#allocation8 + $0x38] ss:$24 sps:$4 sm:$0xff]  }
  0x9d   : > { %1005 = vmatpush1.bf16.msra.mxu1 %v3996_v46  ;;  %v4071_v46 = vld [vmem:[#allocation8 + $0x184] ss:$24 sps:$4 sm:$0xff]   ;;  %v4048_v55 = vld [vmem:[#allocation8 + $0xc8] ss:$24 sps:$4 sm:$0xff]   ;;  %v4054_v59 = vld [vmem:[#allocation8 + $0xf8] ss:$24 sps:$4 sm:$0xff]  }
  0x9e   : > { %1006 = vmatprep.subr.bf16.mxu1 %v3997_v47  ;;  %v4036_v47 = vld [vmem:[#allocation8 + $0x68] ss:$24 sps:$4 sm:$0xff]   ;;  %v4062_v60 = vld [vmem:[#allocation8 + $0x12c] ss:$24 sps:$4 sm:$0xff]   ;;  %v4080_v7 = vld [vmem:[#allocation8 + $0x1bc] ss:$24 sps:$4 sm:$0xff]  }
  0x9f   : > { %934 = vmatpush1.bf16.msra.mxu0 %v3951_v28  ;;  %v4018_v28 = vld [vmem:[#allocation6 + $0x1ec] ss:$16 sps:$4 sm:$0xff]   ;;  %v4081_v57 = vld [vmem:[#allocation8 + $0x1e0] ss:$24 sps:$4 sm:$0xff]   ;;  %v4099_v5 = vld [vmem:[#allocation8 + $0x270] ss:$24 sps:$4 sm:$0xff]  }
  0xa0   : > { %935 = vmatprep.subr.bf16.mxu0 %v3952_v29  ;;  %v4974_v29 = vpack.c.bf16 %v502_v23, %v500_v21  ;;  %v4074_v4 = vld [vmem:[#allocation8 + $0x18c] ss:$24 sps:$4 sm:$0xff]   ;;  %v4105_v19 = vld [vmem:[#allocation8 + $0x2a0] ss:$24 sps:$4 sm:$0xff]   ;;  %v4111_v23 = vld [vmem:[#allocation8 + $0x2d0] ss:$24 sps:$4 sm:$0xff]  }
  0xa1   : > { %1007 = vmatpush1.bf16.msra.mxu1 %v3999_v50  ;;  %v4077_v50 = vld [vmem:[#allocation8 + $0x1b4] ss:$24 sps:$4 sm:$0xff]  }
  0xa2   : > { %1008 = vmatprep.subr.bf16.mxu1 %v4000_v51  ;;  %v4042_v51 = vld [vmem:[#allocation8 + $0x98] ss:$24 sps:$4 sm:$0xff]   ;;  %v4086_v9 = vld [vmem:[#allocation8 + $0x1ec] ss:$24 sps:$4 sm:$0xff]  }
  0xa3   : > { %936 = vmatpush1.bf16.msra.mxu0 %v3954_v32  ;;  %v499_v32 = vld [vmem:[%s4936_s17 + $0x60] sm:$0xff]  ;;  %v4113_v21 = vld [vmem:[#allocation8 + $0x2d4] ss:$24 sps:$4 sm:$0xff]   ;;  %s471_s17 = scalar_lea.vmem [#allocation10], %s4932_s27 }
  0xa4   : > { %937 = vmatprep.subr.bf16.mxu0 %v3955_v33  ;;  %v4020_v33 = vld [vmem:[#allocation6 + $0x1e8] ss:$16 sps:$4 sm:$0xff]   ;;  %v4110_v18 = vld [vmem:[#allocation8 + $0x2ac] ss:$24 sps:$4 sm:$0xff]   ;;  %s3248_s19 = sshll.u32 %s471_s17, 4  ;;  %s5399_s19 = int_to_ptr.vmem [resolvable:$true] %s3248_s19 }
  0xa5   : > { %1009 = vmatpush1.bf16.msra.mxu1 %v4002_v56  ;;  %v4056_v56 = vld [vmem:[#allocation8 + $0xfc] ss:$24 sps:$4 sm:$0xff]   ;;  %p4554_p11 = scmp.lt.s32.totalorder %s5399_s19, %s4552_s21 }
  0xa6   : > { %1010 = vmatprep.subr.bf16.mxu1 %v4003_v58  ;;  %v4089_v58 = vld [vmem:[#allocation8 + $0x214] ss:$24 sps:$4 sm:$0xff]  }
  0xa7   : > { %938 = vmatpush1.bf16.msra.mxu0 %v3957_v36  ;;  %v4024_v36 = vld [vmem:[#allocation8 + $0x8] ss:$24 sps:$4 sm:$0xff]  }
  0xa8   : > { %939 = vmatprep.subr.bf16.mxu0 %v3958_v37  ;;  %v4051_v37 = vld [vmem:[#allocation8 + $0xf0] ss:$24 sps:$4 sm:$0xff]  }
  0xa9   : > { %1011 = vmatpush1.bf16.msra.mxu1 %v4005_v62  ;;  %v4095_v62 = vld [vmem:[#allocation8 + $0x244] ss:$24 sps:$4 sm:$0xff]  }
  0xaa   : > { %1012 = vmatprep.subr.bf16.mxu1 %v4006_v0  ;;  %v4068_v0 = vld [vmem:[#allocation8 + $0x15c] ss:$24 sps:$4 sm:$0xff]  }
  0xab   : > { %940 = vmatpush1.bf16.msra.mxu0 %v3960_v40  ;;  %v4057_v40 = vld [vmem:[#allocation8 + $0x120] ss:$24 sps:$4 sm:$0xff]  }
  0xac   : > { %941 = vmatprep.subr.bf16.mxu0 %v3961_v41  ;;  %v509_v41 = vpack.c.bf16 %v501_v34, %v499_v32 }
  0xad   : > { %1013 = vmatpush1.bf16.msra.mxu1 %v4008_v6  ;;  %v4072_v6 = vld [vmem:[#allocation8 + $0x188] ss:$24 sps:$4 sm:$0xff]  }
  0xae   : > { %1014 = vmatprep.subr.bf16.mxu1 %v4009_v8  ;;  %v4078_v8 = vld [vmem:[#allocation8 + $0x1b8] ss:$24 sps:$4 sm:$0xff]  }
  0xaf   : > { %942 = vmatpush1.bf16.msra.mxu0 %v3963_v44  ;;  %v4038_v44 = vld [vmem:[#allocation8 + $0x6c] ss:$24 sps:$4 sm:$0xff]  }
  0xb0   : > { %943 = vmatprep.subr.bf16.mxu0 %v3964_v45  ;;  %v4063_v45 = vld [vmem:[#allocation8 + $0x150] ss:$24 sps:$4 sm:$0xff]  }
  0xb1   : > { %1015 = vmatpush1.bf16.msra.mxu1 %v4011_v12  ;;  %v4090_v12 = vld [vmem:[#allocation8 + $0x218] ss:$24 sps:$4 sm:$0xff]  }
  0xb2   : > { %1016 = vmatprep.subr.bf16.mxu1 %v4012_v14  ;;  %v4096_v14 = vld [vmem:[#allocation8 + $0x248] ss:$24 sps:$4 sm:$0xff]  }
  0xb3   : > { %944 = vmatpush1.bf16.msra.mxu0 %v3966_v48  ;;  %v4044_v48 = vld [vmem:[#allocation8 + $0x9c] ss:$24 sps:$4 sm:$0xff]  }
  0xb4   : > { %945 = vmatprep.subr.bf16.mxu0 %v3967_v49  ;;  %v4069_v49 = vld [vmem:[#allocation8 + $0x180] ss:$24 sps:$4 sm:$0xff]  }
  0xb5   : > { %1017 = vmatpush1.bf16.msra.mxu1 %v4014_v20  ;;  %v4108_v20 = vld [vmem:[#allocation8 + $0x2a8] ss:$24 sps:$4 sm:$0xff]  }
  0xb6   : > { %1018 = vmatprep.subr.bf16.mxu1 %v4015_v22  ;;  %v4116_v22 = vld [vmem:[#allocation8 + $0x2dc] ss:$24 sps:$4 sm:$0xff]  }
  0xb7   : > { %946 = vmatpush1.bf16.msra.mxu0 %v3969_v52  ;;  %v4050_v52 = vld [vmem:[#allocation8 + $0xcc] ss:$24 sps:$4 sm:$0xff]  }
  0xb8   : > { %947 = vmatprep.subr.bf16.mxu0 %v3970_v53  ;;  %v4075_v53 = vld [vmem:[#allocation8 + $0x1b0] ss:$24 sps:$4 sm:$0xff]  }
  0xb9   : > { %1019 = vmatpush1.bf16.msra.mxu1 %v4017_v26  ;;  %v4122_v26 = vld [vmem:[#allocation8 + $0x30c] ss:$24 sps:$4 sm:$0xff]  }
  0xba   : > { %1020 = vmatprep.subr.bf16.mxu1 %v4018_v28 }
  0xbb   : > { %948 = vmatpush1.bf16.msra.mxu0 %v3972_v54  ;;  %v4083_v54 = vld [vmem:[#allocation8 + $0x1e4] ss:$24 sps:$4 sm:$0xff]  }
  0xbc   : > { %2295 = vmatprep.subr.bf16.mxu0 %v4023_v61  ;;  %v4087_v61 = vld [vmem:[#allocation8 + $0x210] ss:$24 sps:$4 sm:$0xff]  }
  0xbd   : > { %1021 = vmatpush1.bf16.msra.mxu1 %v4020_v33 }
  0xbe   : > { %950 = vmatmul.mubr.bf16.vlgmr.msra.gmra.mrb[0].mxu0 %v4952_v63  ;;  %2441 = vmatprep.subr.bf16.mxu1 %v4026_v35 }
  0xbf   : > { %959 = vmatprep.mubr.bf16.mxu0 %v4954_v1  ;;  %2296 = vmatpush1.bf16.msra.mxu0 %v4021_v2  ;;  %v4101_v2 = vld [vmem:[#allocation8 + $0x274] ss:$24 sps:$4 sm:$0xff]  }
  0xc0   : > { %2297 = vmatprep.subr.bf16.mxu0 %v4029_v3  ;;  %1023 = vmatmul.mubr.bf16.vlgmr.msra.gmra.mrb[0].mxu1 %v4952_v63  ;;  %v4060_v63 = vld [vmem:[#allocation8 + $0x128] ss:$24 sps:$4 sm:$0xff]   ;;  %v4066_v3 = vld [vmem:[#allocation8 + $0x158] ss:$24 sps:$4 sm:$0xff]  }
  0xc1   : > { %1032 = vmatprep.mubr.bf16.mxu1 %v4954_v1  ;;  %2442 = vmatpush1.bf16.msra.mxu1 %v4024_v36  ;;  %v4093_v1 = vld [vmem:[#allocation8 + $0x240] ss:$24 sps:$4 sm:$0xff]  }
  0xc2   : > { %2443 = vmatprep.subr.bf16.mxu1 %v4032_v39 }
  0xc3   : > { %2298 = vmatpush1.bf16.msra.mxu0 %v4027_v10  ;;  %v4084_v10 = vld [vmem:[#allocation8 + $0x1e8] ss:$24 sps:$4 sm:$0xff]  }
  0xc4   : > { %2299 = vmatprep.subr.bf16.mxu0 %v4035_v11  ;;  %v4092_v11 = vld [vmem:[#allocation8 + $0x21c] ss:$24 sps:$4 sm:$0xff]  }
  0xc5   : > { %2444 = vmatpush1.bf16.msra.mxu1 %v4030_v43 }
  0xc6   : > { %960 = vmatmul.mubr.bf16.gmra.mrb[4].mxu0 %v4962_v13  ;;  %2445 = vmatprep.subr.bf16.mxu1 %v4038_v44 }
  0xc7   : > { %969 = vmatprep.mubr.bf16.mxu0 %v4964_v15  ;;  %2300 = vmatpush1.bf16.msra.mxu0 %v4033_v16  ;;  %v4102_v16 = vld [vmem:[#allocation8 + $0x278] ss:$24 sps:$4 sm:$0xff]  }
  0xc8   : > { %2301 = vmatprep.subr.bf16.mxu0 %v4041_v17  ;;  %1033 = vmatmul.mubr.bf16.gmra.mrb[4].mxu1 %v4962_v13  ;;  %v4098_v13 = vld [vmem:[#allocation8 + $0x24c] ss:$24 sps:$4 sm:$0xff]  }
  0xc9   : > { %1042 = vmatprep.mubr.bf16.mxu1 %v4964_v15  ;;  %2446 = vmatpush1.bf16.msra.mxu1 %v4036_v47  ;;  %v4104_v15 = vld [vmem:[#allocation8 + $0x27c] ss:$24 sps:$4 sm:$0xff]  }
  0xca   : > { %2447 = vmatprep.subr.bf16.mxu1 %v4044_v48  ;;  %v4107_v17 = vld [vmem:[#allocation8 + $0x2a4] ss:$24 sps:$4 sm:$0xff]   ;;  %v4117_v48 = vld [vmem:[#allocation8 + $0x300] ss:$24 sps:$4 sm:$0xff]  }
  0xcb   : > { %2302 = vmatpush1.bf16.msra.mxu0 %v4039_v24  ;;  %v4114_v24 = vld [vmem:[#allocation8 + $0x2d8] ss:$24 sps:$4 sm:$0xff]  }
  0xcc   : > { %2303 = vmatprep.subr.bf16.mxu0 %v4047_v25  ;;  %v4119_v25 = vld [vmem:[#allocation8 + $0x304] ss:$24 sps:$4 sm:$0xff]  }
  0xcd   : > { %2448 = vmatpush1.bf16.msra.mxu1 %v4042_v51  ;;  %v4125_v51 = vld [vmem:[#allocation8 + $0x334] ss:$24 sps:$4 sm:$0xff]  }
  0xce   : > { %970 = vmatmul.mubr.bf16.gmra.mrb[8].mxu0 %v4972_v27  ;;  %2449 = vmatprep.subr.bf16.mxu1 %v4050_v52  ;;  %v4128_v52 = vld [vmem:[#allocation8 + $0x33c] ss:$24 sps:$4 sm:$0xff]  }
  0xcf   : > { %979 = vmatprep.mubr.bf16.mxu0 %v4974_v29  ;;  %2304 = vmatpush1.bf16.msra.mxu0 %v4045_v30  ;;  %v4994_v30 = vld [vmem:[%s5512_s2] sm:$0xf] }
  0xd0   : > { %2305 = vmatprep.subr.bf16.mxu0 %v4053_v31  ;;  %1043 = vmatmul.mubr.bf16.gmra.mrb[8].mxu1 %v4972_v27  ;;  %v577_v27 = vlaneseq }
  0xd1   : > { %1052 = vmatprep.mubr.bf16.mxu1 %v4974_v29  ;;  %2450 = vmatpush1.bf16.msra.mxu1 %v4048_v55 }
  0xd2   : > { %2451 = vmatprep.subr.bf16.mxu1 %v4056_v56  ;;  %v4986_v28 = vshrl.u32 %v577_v27, 7  ;;  %v4146_v27 = vld [vmem:[#allocation8 + $0x3cc] ss:$24 sps:$4 sm:$0xff]  }
  0xd3   : > { %2306 = vmatpush1.bf16.msra.mxu0 %v4051_v37 }
  0xd4   : > { %2307 = vmatprep.subr.bf16.mxu0 %v4059_v38  ;;  %v4989_v29 = vsub.s32 0, %v4986_v28  ;;  %v4997_v31 = vsub.s32 1, %v4986_v28 }
  0xd5   : > { %2452 = vmatpush1.bf16.msra.mxu1 %v4054_v59 }
  0xd6   : > { %980 = vmatmul.mubr.bf16.gmra.mrb[12].mxu0 %v509_v41  ;;  %2453 = vmatprep.subr.bf16.mxu1 %v4062_v60  ;;  %5558 = vst [vmem:[#allocation19_spill] sm:$0xff] %v4997_v31  ;;  %v5001_v32 = vrot.slane %v4994_v30, %v4989_v29  ;;  %v5005_v33 = vrot.slane %v4994_v30, %v4997_v31  ;;  %v4123_v60 = vld [vmem:[#allocation8 + $0x330] ss:$24 sps:$4 sm:$0xff]  }
  0xd7   : > { %2308 = vmatpush1.bf16.msra.mxu0 %v4057_v40 }
  0xd8   : > { %2309 = vmatprep.subr.bf16.mxu0 %v4065_v42  ;;  %1053 = vmatmul.mubr.bf16.gmra.mrb[12].mxu1 %v509_v41 }
  0xd9   : > { %2454 = vmatpush1.bf16.msra.mxu1 %v4060_v63 }
  0xda   : > { %2455 = vmatprep.subr.bf16.mxu1 %v4068_v0  ;;  %v4131_v0 = vld [vmem:[#allocation8 + $0x364] ss:$24 sps:$4 sm:$0xff]  }
  0xdb   : > { %2310 = vmatpush1.bf16.msra.mxu0 %v4063_v45 }
  0xdc   : > { %2311 = vmatprep.subr.bf16.mxu0 %v4071_v46 }
  0xdd   : > { %2456 = vmatpush1.bf16.msra.mxu1 %v4066_v3 }
  0xde   : > { %2457 = vmatprep.subr.bf16.mxu1 %v4074_v4 }
  0xdf   : > { %2312 = vmatpush1.bf16.msra.mxu0 %v4069_v49  ;;  %v4120_v49 = vld [vmem:[#allocation8 + $0x308] ss:$24 sps:$4 sm:$0xff]  }
  0xe0   : > { %2313 = vmatprep.subr.bf16.mxu0 %v4077_v50 }
  0xe1   : > { %2458 = vmatpush1.bf16.msra.mxu1 %v4072_v6  ;;  %v4129_v6 = vld [vmem:[#allocation8 + $0x360] ss:$24 sps:$4 sm:$0xff]  }
  0xe2   : > { %2459 = vmatprep.subr.bf16.mxu1 %v4080_v7  ;;  %v4132_v7 = vld [vmem:[#allocation8 + $0x368] ss:$24 sps:$4 sm:$0xff]  }
  0xe3   : > { %2314 = vmatpush1.bf16.msra.mxu0 %v4075_v53 }
  0xe4   : > { %2315 = vmatprep.subr.bf16.mxu0 %v4083_v54 }
  0xe5   : > { %2460 = vmatpush1.bf16.msra.mxu1 %v4078_v8 }
  0xe6   : > { %2461 = vmatprep.subr.bf16.mxu1 %v4086_v9 }
  0xe7   : > { %2316 = vmatpush1.bf16.msra.mxu0 %v4081_v57 }
  0xe8   : > { %2317 = vmatprep.subr.bf16.mxu0 %v4089_v58 }
  0xe9   : > { %2462 = vmatpush1.bf16.msra.mxu1 %v4084_v10  ;;  %v5031_v10 = vsub.s32 3, %v4986_v28 }
  0xea   : > { %2463 = vmatprep.subr.bf16.mxu1 %v4092_v11  ;;  %v4137_v11 = vld [vmem:[#allocation8 + $0x394] ss:$24 sps:$4 sm:$0xff]  }
  0xeb   : > { %2318 = vmatpush1.bf16.msra.mxu0 %v4087_v61  ;;  %v4126_v61 = vld [vmem:[#allocation8 + $0x338] ss:$24 sps:$4 sm:$0xff]   ;;  %5559 = vst [vmem:[#allocation20_spill] sm:$0xff] %v5031_v10 }
  0xec   : > { %2319 = vmatprep.subr.bf16.mxu0 %v4095_v62 }
  0xed   : > { %2464 = vmatpush1.bf16.msra.mxu1 %v4090_v12  ;;  %v4140_v12 = vld [vmem:[#allocation8 + $0x39c] ss:$24 sps:$4 sm:$0xff]  }
  0xee   : > { %2465 = vmatprep.subr.bf16.mxu1 %v4098_v13 }
  0xef   : > { %2320 = vmatpush1.bf16.msra.mxu0 %v4093_v1  ;;  %v4134_v1 = vld [vmem:[#allocation8 + $0x36c] ss:$24 sps:$4 sm:$0xff]  }
  0xf0   : > { %2321 = vmatprep.subr.bf16.mxu0 %v4101_v2 }
  0xf1   : > { %2466 = vmatpush1.bf16.msra.mxu1 %v4096_v14 }
  0xf2   : > { %2467 = vmatprep.subr.bf16.mxu1 %v4104_v15 }
  0xf3   : > { %2322 = vmatpush1.bf16.msra.mxu0 %v4099_v5  ;;  %v5026_v5 = vsub.s32 2, %v4986_v28 }
  0xf4   : > { %2323 = vmatprep.subr.bf16.mxu0 %v4107_v17 }
  0xf5   : > { %2468 = vmatpush1.bf16.msra.mxu1 %v4102_v16 }
  0xf6   : > { %2469 = vmatprep.subr.bf16.mxu1 %v4110_v18 }
  0xf7   : > { %2324 = vmatpush1.bf16.msra.mxu0 %v4105_v19 }
  0xf8   : > { %2325 = vmatprep.subr.bf16.mxu0 %v4113_v21  ;;  %v4135_v21 = vld [vmem:[#allocation8 + $0x390] ss:$24 sps:$4 sm:$0xff]  }
  0xf9   : > { %2470 = vmatpush1.bf16.msra.mxu1 %v4108_v20  ;;  %v5042_v20 = vrot.slane %v4994_v30, %v5026_v5 }
  0xfa   : > { %2471 = vmatprep.subr.bf16.mxu1 %v4116_v22  ;;  %v4138_v22 = vld [vmem:[#allocation8 + $0x398] ss:$24 sps:$4 sm:$0xff]  }
  0xfb   : > { %2326 = vmatpush1.bf16.msra.mxu0 %v4111_v23 }
  0xfc   : > { %2368 = vmatprep.subr.bf16.mxu0 %v4119_v25  ;;  %v5047_v25 = vrot.slane %v4994_v30, %v5031_v10 }
  0xfd   : > { %2472 = vmatpush1.bf16.msra.mxu1 %v4114_v24 }
  0xfe   : > { %2514 = vmatprep.subr.bf16.mxu1 %v4122_v26  ;;  %v4143_v26 = vld [vmem:[#allocation8 + $0x3c4] ss:$24 sps:$4 sm:$0xff]  }
 0x191   : > { %v951_v34 = vpop.f32.mrb[0].mxu0 }
 0x192   : > { %v952_v35 = vadd.f32 %v951_v34, %v5001_v32  ;;  %v953_v36 = vpop.f32.mrb[1].mxu0 }
 0x193   : > { %v954_v37 = vadd.f32 %v953_v36, %v5005_v33  ;;  %v955_v38 = vpop.f32.mrb[2].mxu0  ;;  %v1024_v36 = vpop.f32.mrb[0].mxu1 }
 0x194   : > { %v956_v39 = vadd.f32 %v955_v38, %v5001_v32  ;;  %v957_v40 = vpop.f32.mrb[3].mxu0  ;;  %v1063_v42 = vmax.f32 %v952_v35, 0.0 }
 0x195   : > { %v958_v41 = vadd.f32 %v957_v40, %v5005_v33  ;;  %v1064_v44 = vmax.f32 %v954_v37, 0.0  ;;  %v4141_v37 = vld [vmem:[#allocation8 + $0x3c0] ss:$24 sps:$4 sm:$0xff]   ;;  %v1026_v40 = vpop.f32.mrb[1].mxu1 }
 0x196   : > { %v1067_v43 = vmax.f32 %v956_v39, 0.0  ;;  %v1025_v39 = vadd.f32 %v1024_v36, %v5042_v20  ;;  %v4159_v36 = vld [vmem:[#allocation8 + $0x450] ss:$24 sps:$4 sm:$0xff]  }
 0x197   : > { %v1068_v45 = vmax.f32 %v958_v41, 0.0  ;;  %v4144_v41 = vld [vmem:[#allocation8 + $0x3c8] ss:$24 sps:$4 sm:$0xff]  }
 0x198   : > { %v5011_v46 = vpack.c.bf16 %v1067_v43, %v1063_v42  ;;  %v4149_v42 = vld [vmem:[#allocation8 + $0x3f4] ss:$24 sps:$4 sm:$0xff]  }
 0x199   : > { %v5013_v47 = vpack.c.bf16 %v1068_v45, %v1064_v44  ;;  %v961_v50 = vpop.f32.mrb[4].mxu0  ;;  %v1027_v44 = vadd.f32 %v1026_v40, %v5047_v25  ;;  %v1028_v45 = vpop.f32.mrb[2].mxu1  ;;  %v4167_v40 = vld [vmem:[#allocation8 + $0x484] ss:$24 sps:$4 sm:$0xff]  }
 0x19a   : > { %v962_v53 = vadd.f32 %v961_v50, %v5001_v32  ;;  %v963_v54 = vpop.f32.mrb[5].mxu0 }
 0x19b   : > { %2327 = vmatprep.mubr.bf16.mxu0 %v5013_v47  ;;  %2473 = vmatprep.mubr.bf16.mxu1 %v5013_v47  ;;  %v964_v55 = vadd.f32 %v963_v54, %v5005_v33  ;;  %v965_v56 = vpop.f32.mrb[6].mxu0 }
 0x19c   : > { %2328 = vmatmul.mubr.bf16.vlgmr.msra.gmra.mrb[16].mxu0 %v5011_v46  ;;  %2474 = vmatmul.mubr.bf16.vlgmr.msra.gmra.mrb[16].mxu1 %v5011_v46  ;;  %v1071_v57 = vmax.f32 %v962_v53, 0.0  ;;  %v966_v58 = vadd.f32 %v965_v56, %v5001_v32  ;;  %v967_v59 = vpop.f32.mrb[7].mxu0  ;;  %v1030_v53 = vpop.f32.mrb[3].mxu1  ;;  %v1066_v56 = vmax.f32 %v1027_v44, 0.0 }
 0x19d   : > { %2369 = vmatpush1.bf16.msra.mxu0 %v4117_v48  ;;  %2515 = vmatpush1.bf16.msra.mxu1 %v4120_v49  ;;  %v1072_v62 = vmax.f32 %v964_v55, 0.0  ;;  %v968_v63 = vadd.f32 %v967_v59, %v5005_v33  ;;  %v4152_v48 = vld [vmem:[#allocation8 + $0x3fc] ss:$24 sps:$4 sm:$0xff]  }
 0x19e   : > { %2370 = vmatprep.subr.bf16.mxu0 %v4125_v51  ;;  %2516 = vmatprep.subr.bf16.mxu1 %v4128_v52  ;;  %v1075_v2 = vmax.f32 %v966_v58, 0.0  ;;  %v1065_v51 = vmax.f32 %v1025_v39, 0.0  ;;  %v1029_v52 = vadd.f32 %v1028_v45, %v5042_v20 }
 0x19f   : > { %v1076_v3 = vmax.f32 %v968_v63, 0.0  ;;  %v4150_v63 = vld [vmem:[#allocation8 + $0x3f8] ss:$24 sps:$4 sm:$0xff]  }
 0x1a0   : > { %v5023_v4 = vpack.c.bf16 %v1075_v2, %v1071_v57  ;;  %v1031_v57 = vadd.f32 %v1030_v53, %v5047_v25  ;;  %v4173_v53 = vld [vmem:[#allocation8 + $0x4b4] ss:$24 sps:$4 sm:$0xff]  }
 0x1a1   : > { %2371 = vmatpush1.bf16.msra.mxu0 %v4123_v60  ;;  %2517 = vmatpush1.bf16.msra.mxu1 %v4126_v61  ;;  %v5028_v8 = vpack.c.bf16 %v1076_v3, %v1072_v62  ;;  %v971_v9 = vpop.f32.mrb[8].mxu0  ;;  %v1069_v61 = vmax.f32 %v1029_v52, 0.0  ;;  %v4147_v62 = vld [vmem:[#allocation8 + $0x3f0] ss:$24 sps:$4 sm:$0xff]   ;;  %v4155_v3 = vld [vmem:[#allocation8 + $0x424] ss:$24 sps:$4 sm:$0xff]  }
 0x1a2   : > { %2372 = vmatprep.subr.bf16.mxu0 %v4131_v0  ;;  %2518 = vmatprep.subr.bf16.mxu1 %v4134_v1  ;;  %v972_v13 = vadd.f32 %v971_v9, %v5001_v32  ;;  %v973_v14 = vpop.f32.mrb[9].mxu0  ;;  %v1070_v2 = vmax.f32 %v1031_v57, 0.0 }
 0x1a3   : > { %v974_v15 = vadd.f32 %v973_v14, %v5005_v33  ;;  %v975_v16 = vpop.f32.mrb[10].mxu0  ;;  %2337 = vmatprep.mubr.bf16.mxu0 %v5028_v8  ;;  %2483 = vmatprep.mubr.bf16.mxu1 %v5028_v8 }
 0x1a4   : > { %v1079_v17 = vmax.f32 %v972_v13, 0.0  ;;  %v976_v18 = vadd.f32 %v975_v16, %v5001_v32  ;;  %v977_v19 = vpop.f32.mrb[11].mxu0  ;;  %2338 = vmatmul.mubr.bf16.gmra.mrb[20].mxu0 %v5023_v4  ;;  %2484 = vmatmul.mubr.bf16.gmra.mrb[20].mxu1 %v5023_v4  ;;  %v4156_v16 = vld [vmem:[#allocation8 + $0x428] ss:$24 sps:$4 sm:$0xff]  }
 0x1a5   : > { %2373 = vmatpush1.bf16.msra.mxu0 %v4129_v6  ;;  %2519 = vmatpush1.bf16.msra.mxu1 %v4132_v7  ;;  %v1080_v23 = vmax.f32 %v974_v15, 0.0  ;;  %v978_v24 = vadd.f32 %v977_v19, %v5005_v33  ;;  %v4158_v6 = vld [vmem:[#allocation8 + $0x42c] ss:$24 sps:$4 sm:$0xff]  }
 0x1a6   : > { %2374 = vmatprep.subr.bf16.mxu0 %v4137_v11  ;;  %2520 = vmatprep.subr.bf16.mxu1 %v4140_v12  ;;  %v1083_v34 = vmax.f32 %v976_v18, 0.0  ;;  %v5067_v11 = vpack.c.bf16 %v1070_v2, %v1066_v56  ;;  %v1034_v12 = vpop.f32.mrb[4].mxu1 }
 0x1a7   : > { %v1084_v35 = vmax.f32 %v978_v24, 0.0  ;;  %v1035_v14 = vadd.f32 %v1034_v12, %v5042_v20  ;;  %v1036_v15 = vpop.f32.mrb[5].mxu1  ;;  %v4177_v12 = vld [vmem:[#allocation8 + $0x4e0] ss:$24 sps:$4 sm:$0xff]  }
 0x1a8   : > { %v5049_v38 = vpack.c.bf16 %v1083_v34, %v1079_v17  ;;  %v1037_v18 = vadd.f32 %v1036_v15, %v5047_v25  ;;  %v1038_v19 = vpop.f32.mrb[6].mxu1 }
 0x1a9   : > { %2375 = vmatpush1.bf16.msra.mxu0 %v4135_v21  ;;  %2521 = vmatpush1.bf16.msra.mxu1 %v4138_v22  ;;  %v5052_v43 = vpack.c.bf16 %v1084_v35, %v1080_v23  ;;  %v981_v30 = vpop.f32.mrb[12].mxu0  ;;  %v4161_v21 = vld [vmem:[#allocation8 + $0x454] ss:$24 sps:$4 sm:$0xff]   ;;  %v1073_v23 = vmax.f32 %v1035_v14, 0.0  ;;  %v1039_v24 = vadd.f32 %v1038_v19, %v5042_v20  ;;  %v4180_v14 = vld [vmem:[#allocation8 + $0x4e8] ss:$24 sps:$4 sm:$0xff]  }
 0x1aa   : > { %2376 = vmatprep.subr.bf16.mxu0 %v4143_v26  ;;  %2522 = vmatprep.subr.bf16.mxu1 %v4146_v27  ;;  %v982_v49 = vadd.f32 %v981_v30, %v5001_v32  ;;  %v983_v50 = vpop.f32.mrb[13].mxu0  ;;  %v4164_v22 = vld [vmem:[#allocation8 + $0x45c] ss:$24 sps:$4 sm:$0xff]   ;;  %v1040_v26 = vpop.f32.mrb[7].mxu1  ;;  %v1074_v27 = vmax.f32 %v1037_v18, 0.0 }
 0x1ab   : > { %v984_v54 = vadd.f32 %v983_v50, %v5005_v33  ;;  %v985_v55 = vpop.f32.mrb[14].mxu0  ;;  %2347 = vmatprep.mubr.bf16.mxu0 %v5052_v43  ;;  %2493 = vmatprep.mubr.bf16.mxu1 %v5052_v43  ;;  %v1041_v34 = vadd.f32 %v1040_v26, %v5047_v25  ;;  %v1077_v35 = vmax.f32 %v1039_v24, 0.0  ;;  %v1044_v44 = vpop.f32.mrb[8].mxu1  ;;  %v4168_v50 = vld [vmem:[#allocation8 + $0x488] ss:$24 sps:$4 sm:$0xff]  }
 0x1ac   : > { %v1087_v58 = vmax.f32 %v982_v49, 0.0  ;;  %v986_v59 = vadd.f32 %v985_v55, %v5001_v32  ;;  %v987_v60 = vpop.f32.mrb[15].mxu0  ;;  %2348 = vmatmul.mubr.bf16.gmra.mrb[24].mxu0 %v5049_v38  ;;  %2494 = vmatmul.mubr.bf16.gmra.mrb[24].mxu1 %v5049_v38  ;;  %v5065_v32 = vpack.c.bf16 %v1069_v61, %v1065_v51  ;;  %v1045_v45 = vadd.f32 %v1044_v44, %v5042_v20  ;;  %v4165_v49 = vld [vmem:[#allocation8 + $0x480] ss:$24 sps:$4 sm:$0xff]   ;;  %v4171_v61 = vld [vmem:[#allocation8 + $0x4b0] ss:$24 sps:$4 sm:$0xff]  }
 0x1ad   : > { %2377 = vmatpush1.bf16.msra.mxu0 %v4141_v37  ;;  %2523 = vmatpush1.bf16.msra.mxu1 %v4144_v41  ;;  %v1088_v0 = vmax.f32 %v984_v54, 0.0  ;;  %v988_v1 = vadd.f32 %v987_v60, %v5005_v33  ;;  %v4153_v33 = vld [vmem:[#allocation8 + $0x420] ss:$24 sps:$4 sm:$0xff]   ;;  %v1078_v39 = vmax.f32 %v1041_v34, 0.0  ;;  %v4170_v41 = vld [vmem:[#allocation8 + $0x48c] ss:$24 sps:$4 sm:$0xff]  }
 0x1ae   : > { %2378 = vmatprep.subr.bf16.mxu0 %v4149_v42  ;;  %2524 = vmatprep.subr.bf16.mxu1 %v4152_v48  ;;  %v1091_v7 = vmax.f32 %v986_v59, 0.0  ;;  %v4162_v37 = vld [vmem:[#allocation8 + $0x458] ss:$24 sps:$4 sm:$0xff]   ;;  %v5081_v42 = vpack.c.bf16 %v1077_v35, %v1073_v23  ;;  %v1046_v48 = vpop.f32.mrb[9].mxu1  ;;  %v4176_v54 = vld [vmem:[#allocation8 + $0x4bc] ss:$24 sps:$4 sm:$0xff]  }
 0x1af   : > { %v1092_v9 = vmax.f32 %v988_v1, 0.0  ;;  %v5085_v30 = vpack.c.bf16 %v1078_v39, %v1074_v27  ;;  %v1047_v51 = vadd.f32 %v1046_v48, %v5047_v25  ;;  %v1048_v52 = vpop.f32.mrb[10].mxu1  ;;  %v1081_v55 = vmax.f32 %v1045_v45, 0.0  ;;  %v4182_v1 = vld [vmem:[#allocation8 + $0x4ec] ss:$24 sps:$4 sm:$0xff]  }
 0x1b0   : > { %v5069_v13 = vpack.c.bf16 %v1091_v7, %v1087_v58  ;;  %v1049_v56 = vadd.f32 %v1048_v52, %v5042_v20  ;;  %v1050_v57 = vpop.f32.mrb[11].mxu1  ;;  %v4188_v18 = vld [vmem:[#allocation8 + $0x51c] ss:$24 sps:$4 sm:$0xff]   ;;  %v4183_v27 = vld [vmem:[#allocation8 + $0x510] ss:$24 sps:$4 sm:$0xff]  }
 0x1b1   : > { %2379 = vmatpush1.bf16.msra.mxu0 %v4147_v62  ;;  %2525 = vmatpush1.bf16.msra.mxu1 %v4150_v63  ;;  %v5072_v17 = vpack.c.bf16 %v1092_v9, %v1088_v0  ;;  %v1082_v58 = vmax.f32 %v1047_v51, 0.0  ;;  %v1051_v59 = vadd.f32 %v1050_v57, %v5047_v25  ;;  %v4174_v62 = vld [vmem:[#allocation8 + $0x4b8] ss:$24 sps:$4 sm:$0xff]   ;;  %v4179_v0 = vld [vmem:[#allocation8 + $0x4e4] ss:$24 sps:$4 sm:$0xff]  }
 0x1b2   : > { %2380 = vmatprep.subr.bf16.mxu0 %v4155_v3  ;;  %2526 = vmatprep.subr.bf16.mxu1 %v4158_v6  ;;  %v1085_v60 = vmax.f32 %v1049_v56, 0.0  ;;  %v1054_v6 = vpop.f32.mrb[12].mxu1  ;;  %v4186_v34 = vld [vmem:[#allocation8 + $0x518] ss:$24 sps:$4 sm:$0xff]   ;;  %v4200_v44 = vld [vmem:[#allocation8 + $0x57c] ss:$24 sps:$4 sm:$0xff]  }
 0x1b3   : > { %2357 = vmatprep.mubr.bf16.mxu0 %v5072_v17  ;;  %2503 = vmatprep.mubr.bf16.mxu1 %v5072_v17  ;;  %v1086_v63 = vmax.f32 %v1051_v59, 0.0  ;;  %v1055_v7 = vadd.f32 %v1054_v6, %v5042_v20  ;;  %v1056_v9 = vpop.f32.mrb[13].mxu1  ;;  %v4195_v45 = vld [vmem:[#allocation8 + $0x570] ss:$24 sps:$4 sm:$0xff]   ;;  %v4201_v51 = vld [vmem:[#allocation8 + $0x5a0] ss:$24 sps:$4 sm:$0xff]  }
 0x1b4   : > { %2358 = vmatmul.mubr.bf16.gmra.mrb[28].mxu0 %v5069_v13  ;;  %2504 = vmatmul.mubr.bf16.gmra.mrb[28].mxu1 %v5069_v13  ;;  %v5091_v2 = vpack.c.bf16 %v1085_v60, %v1081_v55  ;;  %v1057_v15 = vadd.f32 %v1056_v9, %v5047_v25  ;;  %v4198_v48 = vld [vmem:[#allocation8 + $0x578] ss:$24 sps:$4 sm:$0xff]   ;;  %v4204_v52 = vld [vmem:[#allocation8 + $0x5a8] ss:$24 sps:$4 sm:$0xff]   ;;  %v4215_v57 = vld [vmem:[#allocation8 + $0x14] ss:$24 sps:$4 sm:$0xff]  }
 0x1b5   : > { %2381 = vmatpush1.bf16.msra.mxu0 %v4153_v33  ;;  %2527 = vmatpush1.bf16.msra.mxu1 %v4156_v16  ;;  %v5093_v3 = vpack.c.bf16 %v1086_v63, %v1082_v58  ;;  %v1058_v33 = vpop.f32.mrb[14].mxu1  ;;  %v4185_v16 = vld [vmem:[#allocation8 + $0x514] ss:$24 sps:$4 sm:$0xff]   ;;  %v1089_v19 = vmax.f32 %v1055_v7, 0.0  ;;  %v4207_v55 = vld [vmem:[#allocation8 + $0x5d0] ss:$24 sps:$4 sm:$0xff]  }
 0x1b6   : > { %2382 = vmatprep.subr.bf16.mxu0 %v4161_v21  ;;  %2528 = vmatprep.subr.bf16.mxu1 %v4164_v22  ;;  %v1059_v21 = vadd.f32 %v1058_v33, %v5042_v20  ;;  %v1060_v22 = vpop.f32.mrb[15].mxu1  ;;  %v1090_v23 = vmax.f32 %v1057_v15, 0.0  ;;  %v4189_v20 = vld [vmem:[#allocation8 + $0x540] ss:$24 sps:$4 sm:$0xff]   ;;  %v4213_v58 = vld [vmem:[#allocation8 + $0x10] ss:$24 sps:$4 sm:$0xff]  }
 0x1b7   : > { %2400 = vmatprep.mubr.bf16.mxu0 %v5067_v11  ;;  %2546 = vmatprep.mubr.bf16.mxu1 %v5067_v11  ;;  %v1061_v24 = vadd.f32 %v1060_v22, %v5047_v25  ;;  %v4197_v25 = vld [vmem:[#allocation8 + $0x574] ss:$24 sps:$4 sm:$0xff]   ;;  %v4210_v56 = vld [vmem:[#allocation8 + $0x5d8] ss:$24 sps:$4 sm:$0xff]   ;;  %v4218_v59 = vld [vmem:[#allocation8 + $0x44] ss:$24 sps:$4 sm:$0xff]  }
 0x1b8   : > { %v1093_v26 = vmax.f32 %v1059_v21, 0.0  ;;  %v4216_v60 = vld [vmem:[#allocation8 + $0x40] ss:$24 sps:$4 sm:$0xff]   ;;  %v4224_v63 = vld [vmem:[#allocation8 + $0xa4] ss:$24 sps:$4 sm:$0xff]  }
 0x1b9   : > { %2383 = vmatpush1.bf16.msra.mxu0 %v4159_v36  ;;  %2529 = vmatpush1.bf16.msra.mxu1 %v4162_v37  ;;  %v1094_v35 = vmax.f32 %v1061_v24, 0.0  ;;  %v4191_v36 = vld [vmem:[#allocation8 + $0x544] ss:$24 sps:$4 sm:$0xff]   ;;  %v4225_v6 = vld [vmem:[#allocation8 + $0xd0] ss:$24 sps:$4 sm:$0xff]  }
 0x1ba   : > { %2384 = vmatprep.subr.bf16.mxu0 %v4167_v40  ;;  %2530 = vmatprep.subr.bf16.mxu1 %v4170_v41  ;;  %v4194_v37 = vld [vmem:[#allocation8 + $0x54c] ss:$24 sps:$4 sm:$0xff]   ;;  %v5099_v39 = vpack.c.bf16 %v1093_v26, %v1089_v19  ;;  %v4192_v41 = vld [vmem:[#allocation8 + $0x548] ss:$24 sps:$4 sm:$0xff]  }
 0x1bb   : > { %v5101_v40 = vpack.c.bf16 %v1094_v35, %v1090_v23  ;;  %v4230_v7 = vld [vmem:[#allocation8 + $0x104] ss:$24 sps:$4 sm:$0xff]   ;;  %v4228_v9 = vld [vmem:[#allocation8 + $0x100] ss:$24 sps:$4 sm:$0xff]   ;;  %v4245_v22 = vld [vmem:[#allocation8 + $0x1f4] ss:$24 sps:$4 sm:$0xff]  }
 0x1bc   : > { %5560 = vst [vmem:[#allocation21_spill] sm:$0xff] %v5099_v39  ;;  %v4236_v15 = vld [vmem:[#allocation8 + $0x164] ss:$24 sps:$4 sm:$0xff]   ;;  %v4234_v33 = vld [vmem:[#allocation8 + $0x160] ss:$24 sps:$4 sm:$0xff]  }
 0x1bd   : > { %2385 = vmatpush1.bf16.msra.mxu0 %v4165_v49  ;;  %2531 = vmatpush1.bf16.msra.mxu1 %v4168_v50  ;;  %v4203_v49 = vld [vmem:[#allocation8 + $0x5a4] ss:$24 sps:$4 sm:$0xff]   ;;  %v4240_v21 = vld [vmem:[#allocation8 + $0x1c0] ss:$24 sps:$4 sm:$0xff]   ;;  %v4243_v23 = vld [vmem:[#allocation8 + $0x1f0] ss:$24 sps:$4 sm:$0xff]  }
 0x1be   : > { %2386 = vmatprep.subr.bf16.mxu0 %v4173_v53  ;;  %2532 = vmatprep.subr.bf16.mxu1 %v4176_v54  ;;  %v4206_v50 = vld [vmem:[#allocation8 + $0x5ac] ss:$24 sps:$4 sm:$0xff]   ;;  %v4212_v54 = vld [vmem:[#allocation8 + $0x5dc] ss:$24 sps:$4 sm:$0xff]   ;;  %v4246_v26 = vld [vmem:[#allocation8 + $0x220] ss:$24 sps:$4 sm:$0xff]  }
 0x1bf   : > { %v4209_v53 = vld [vmem:[#allocation8 + $0x5d4] ss:$24 sps:$4 sm:$0xff]   ;;  %v4242_v19 = vld [vmem:[#allocation8 + $0x1c4] ss:$24 sps:$4 sm:$0xff]  }
 0x1c0   : > { %v4248_v24 = vld [vmem:[#allocation8 + $0x224] ss:$24 sps:$4 sm:$0xff]  }
 0x1c1   : > { %2387 = vmatpush1.bf16.msra.mxu0 %v4171_v61  ;;  %2533 = vmatpush1.bf16.msra.mxu1 %v4174_v62  ;;  %v4221_v61 = vld [vmem:[#allocation8 + $0x74] ss:$24 sps:$4 sm:$0xff]   ;;  %v4219_v62 = vld [vmem:[#allocation8 + $0x70] ss:$24 sps:$4 sm:$0xff]   ;;  %v4254_v35 = vld [vmem:[#allocation8 + $0x284] ss:$24 sps:$4 sm:$0xff]  }
 0x1c2   : > { %2388 = vmatprep.subr.bf16.mxu0 %v4179_v0  ;;  %2534 = vmatprep.subr.bf16.mxu1 %v4182_v1  ;;  %v4222_v0 = vld [vmem:[#allocation8 + $0xa0] ss:$24 sps:$4 sm:$0xff]   ;;  %v4227_v1 = vld [vmem:[#allocation8 + $0xd4] ss:$24 sps:$4 sm:$0xff]  }
 0x1c5   : > { %2389 = vmatpush1.bf16.msra.mxu0 %v4177_v12  ;;  %2535 = vmatpush1.bf16.msra.mxu1 %v4180_v14  ;;  %v4233_v12 = vld [vmem:[#allocation8 + $0x134] ss:$24 sps:$4 sm:$0xff]   ;;  %v4231_v14 = vld [vmem:[#allocation8 + $0x130] ss:$24 sps:$4 sm:$0xff]  }
 0x1c6   : > { %2390 = vmatprep.subr.bf16.mxu0 %v4185_v16  ;;  %2536 = vmatprep.subr.bf16.mxu1 %v4188_v18  ;;  %v4239_v16 = vld [vmem:[#allocation8 + $0x194] ss:$24 sps:$4 sm:$0xff]   ;;  %v4237_v18 = vld [vmem:[#allocation8 + $0x190] ss:$24 sps:$4 sm:$0xff]  }
 0x1c9   : > { %2391 = vmatpush1.bf16.msra.mxu0 %v4183_v27  ;;  %2537 = vmatpush1.bf16.msra.mxu1 %v4186_v34  ;;  %v4251_v27 = vld [vmem:[#allocation8 + $0x254] ss:$24 sps:$4 sm:$0xff]   ;;  %v4249_v34 = vld [vmem:[#allocation8 + $0x250] ss:$24 sps:$4 sm:$0xff]  }
 0x1ca   : > { %2392 = vmatprep.subr.bf16.mxu0 %v4191_v36  ;;  %2538 = vmatprep.subr.bf16.mxu1 %v4194_v37  ;;  %v4252_v36 = vld [vmem:[#allocation8 + $0x280] ss:$24 sps:$4 sm:$0xff]   ;;  %v4257_v37 = vld [vmem:[#allocation8 + $0x2b4] ss:$24 sps:$4 sm:$0xff]  }
 0x1cd   : > { %2393 = vmatpush1.bf16.msra.mxu0 %v4189_v20  ;;  %2539 = vmatpush1.bf16.msra.mxu1 %v4192_v41  ;;  %v4255_v20 = vld [vmem:[#allocation8 + $0x2b0] ss:$24 sps:$4 sm:$0xff]   ;;  %v4260_v41 = vld [vmem:[#allocation8 + $0x2e4] ss:$24 sps:$4 sm:$0xff]  }
 0x1ce   : > { %2394 = vmatprep.subr.bf16.mxu0 %v4197_v25  ;;  %2540 = vmatprep.subr.bf16.mxu1 %v4200_v44  ;;  %v4258_v25 = vld [vmem:[#allocation8 + $0x2e0] ss:$24 sps:$4 sm:$0xff]   ;;  %v4263_v44 = vld [vmem:[#allocation8 + $0x314] ss:$24 sps:$4 sm:$0xff]  }
 0x1d1   : > { %2395 = vmatpush1.bf16.msra.mxu0 %v4195_v45  ;;  %2541 = vmatpush1.bf16.msra.mxu1 %v4198_v48  ;;  %v4261_v45 = vld [vmem:[#allocation8 + $0x310] ss:$24 sps:$4 sm:$0xff]   ;;  %v4266_v48 = vld [vmem:[#allocation8 + $0x344] ss:$24 sps:$4 sm:$0xff]  }
 0x1d2   : > { %2396 = vmatprep.subr.bf16.mxu0 %v4203_v49  ;;  %2542 = vmatprep.subr.bf16.mxu1 %v4206_v50  ;;  %v4264_v49 = vld [vmem:[#allocation8 + $0x340] ss:$24 sps:$4 sm:$0xff]   ;;  %v4269_v50 = vld [vmem:[#allocation8 + $0x374] ss:$24 sps:$4 sm:$0xff]  }
 0x1d5   : > { %2397 = vmatpush1.bf16.msra.mxu0 %v4201_v51  ;;  %2543 = vmatpush1.bf16.msra.mxu1 %v4204_v52  ;;  %v4267_v51 = vld [vmem:[#allocation8 + $0x370] ss:$24 sps:$4 sm:$0xff]   ;;  %v4272_v52 = vld [vmem:[#allocation8 + $0x3a4] ss:$24 sps:$4 sm:$0xff]  }
 0x1d6   : > { %2398 = vmatprep.subr.bf16.mxu0 %v4209_v53  ;;  %2544 = vmatprep.subr.bf16.mxu1 %v4212_v54  ;;  %v4270_v53 = vld [vmem:[#allocation8 + $0x3a0] ss:$24 sps:$4 sm:$0xff]   ;;  %v4275_v54 = vld [vmem:[#allocation8 + $0x3d4] ss:$24 sps:$4 sm:$0xff]  }
 0x1d9   : > { %2399 = vmatpush1.bf16.msra.mxu0 %v4207_v55  ;;  %2545 = vmatpush1.bf16.msra.mxu1 %v4210_v56  ;;  %v4273_v55 = vld [vmem:[#allocation8 + $0x3d0] ss:$24 sps:$4 sm:$0xff]   ;;  %v4278_v56 = vld [vmem:[#allocation8 + $0x404] ss:$24 sps:$4 sm:$0xff]  }
 0x1da   : > { %2587 = vmatprep.subr.bf16.mxu0 %v4215_v57  ;;  %v4276_v57 = vld [vmem:[#allocation8 + $0x400] ss:$24 sps:$4 sm:$0xff]  }
 0x1dc   : > { %2401 = vmatmul.mubr.bf16.vlgmr.msra.gmra.mrb[16].mxu0 %v5065_v32  ;;  %2547 = vmatmul.mubr.bf16.vlgmr.msra.gmra.mrb[16].mxu1 %v5065_v32 }
 0x1dd   : > { %2588 = vmatpush1.bf16.msra.mxu0 %v4213_v58  ;;  %2410 = vmatprep.mubr.bf16.mxu0 %v5085_v30  ;;  %v4281_v58 = vld [vmem:[#allocation8 + $0x434] ss:$24 sps:$4 sm:$0xff]  }
 0x1de   : > { %2589 = vmatprep.subr.bf16.mxu0 %v4218_v59  ;;  %2556 = vmatprep.mubr.bf16.mxu1 %v5085_v30  ;;  %v4279_v59 = vld [vmem:[#allocation8 + $0x430] ss:$24 sps:$4 sm:$0xff]  }
 0x1e1   : > { %2590 = vmatpush1.bf16.msra.mxu0 %v4216_v60  ;;  %v4284_v60 = vld [vmem:[#allocation8 + $0x464] ss:$24 sps:$4 sm:$0xff]  }
 0x1e2   : > { %2591 = vmatprep.subr.bf16.mxu0 %v4221_v61  ;;  %v4282_v61 = vld [vmem:[#allocation8 + $0x460] ss:$24 sps:$4 sm:$0xff]  }
 0x1e4   : > { %2411 = vmatmul.mubr.bf16.gmra.mrb[20].mxu0 %v5081_v42  ;;  %2557 = vmatmul.mubr.bf16.gmra.mrb[20].mxu1 %v5081_v42 }
 0x1e5   : > { %2592 = vmatpush1.bf16.msra.mxu0 %v4219_v62  ;;  %2420 = vmatprep.mubr.bf16.mxu0 %v5093_v3  ;;  %v4287_v62 = vld [vmem:[#allocation8 + $0x494] ss:$24 sps:$4 sm:$0xff]  }
 0x1e6   : > { %2593 = vmatprep.subr.bf16.mxu0 %v4224_v63  ;;  %2566 = vmatprep.mubr.bf16.mxu1 %v5093_v3  ;;  %v4285_v63 = vld [vmem:[#allocation8 + $0x490] ss:$24 sps:$4 sm:$0xff]  }
 0x1e9   : > { %2594 = vmatpush1.bf16.msra.mxu0 %v4222_v0  ;;  %v4290_v0 = vld [vmem:[#allocation8 + $0x4c4] ss:$24 sps:$4 sm:$0xff]  }
 0x1ea   : > { %2595 = vmatprep.subr.bf16.mxu0 %v4227_v1  ;;  %v4288_v1 = vld [vmem:[#allocation8 + $0x4c0] ss:$24 sps:$4 sm:$0xff]  }
 0x1ec   : > { %2421 = vmatmul.mubr.bf16.gmra.mrb[24].mxu0 %v5091_v2  ;;  %2567 = vmatmul.mubr.bf16.gmra.mrb[24].mxu1 %v5091_v2 }
 0x1ed   : > { %2596 = vmatpush1.bf16.msra.mxu0 %v4225_v6  ;;  %2430 = vmatprep.mubr.bf16.mxu0 %v5101_v40  ;;  %v4293_v6 = vld [vmem:[#allocation8 + $0x4f4] ss:$24 sps:$4 sm:$0xff]  }
 0x1ee   : > { %2597 = vmatprep.subr.bf16.mxu0 %v4230_v7  ;;  %2576 = vmatprep.mubr.bf16.mxu1 %v5101_v40  ;;  %v4291_v7 = vld [vmem:[#allocation8 + $0x4f0] ss:$24 sps:$4 sm:$0xff]  }
 0x1f1   : > { %2598 = vmatpush1.bf16.msra.mxu0 %v4228_v9  ;;  %v4296_v9 = vld [vmem:[#allocation8 + $0x524] ss:$24 sps:$4 sm:$0xff]  }
 0x1f2   : > { %2599 = vmatprep.subr.bf16.mxu0 %v4233_v12  ;;  %v4294_v12 = vld [vmem:[#allocation8 + $0x520] ss:$24 sps:$4 sm:$0xff]  }
 0x1f4   : > { %2431 = vmatmul.mubr.bf16.gmra.mrb[28].mxu0 %v5099_v39  ;;  %2577 = vmatmul.mubr.bf16.gmra.mrb[28].mxu1 %v5099_v39 }
 0x1f5   : > { %2600 = vmatpush1.bf16.msra.mxu0 %v4231_v14  ;;  %2619 = vmatprep.mubr.bf16.mxu0 %v5013_v47  ;;  %v4299_v14 = vld [vmem:[#allocation8 + $0x554] ss:$24 sps:$4 sm:$0xff]  }
 0x1f6   : > { %2601 = vmatprep.subr.bf16.mxu0 %v4236_v15  ;;  %v4297_v15 = vld [vmem:[#allocation8 + $0x550] ss:$24 sps:$4 sm:$0xff]  }
 0x1f9   : > { %2602 = vmatpush1.bf16.msra.mxu0 %v4234_v33  ;;  %v4302_v33 = vld [vmem:[#allocation8 + $0x584] ss:$24 sps:$4 sm:$0xff]  }
 0x1fa   : > { %2603 = vmatprep.subr.bf16.mxu0 %v4239_v16  ;;  %v4300_v16 = vld [vmem:[#allocation8 + $0x580] ss:$24 sps:$4 sm:$0xff]  }
 0x1fd   : > { %2604 = vmatpush1.bf16.msra.mxu0 %v4237_v18  ;;  %v4305_v18 = vld [vmem:[#allocation8 + $0x5b4] ss:$24 sps:$4 sm:$0xff]  }
 0x1fe   : > { %2605 = vmatprep.subr.bf16.mxu0 %v4242_v19  ;;  %v4303_v19 = vld [vmem:[#allocation8 + $0x5b0] ss:$24 sps:$4 sm:$0xff]  }
 0x201   : > { %2606 = vmatpush1.bf16.msra.mxu0 %v4240_v21  ;;  %v4308_v21 = vld [vmem:[#allocation8 + $0x5e4] ss:$24 sps:$4 sm:$0xff]  }
 0x202   : > { %2607 = vmatprep.subr.bf16.mxu0 %v4245_v22  ;;  %v4306_v22 = vld [vmem:[#allocation8 + $0x5e0] ss:$24 sps:$4 sm:$0xff]  }
 0x205   : > { %2608 = vmatpush1.bf16.msra.mxu0 %v4243_v23  ;;  %v5136_v23 = vld [vmem:[%s5514_s4] sm:$0x3f] }
 0x206   : > { %2609 = vmatprep.subr.bf16.mxu0 %v4248_v24  ;;  %v5140_v24 = vrot.slane %v5136_v23, %v5031_v10 }
 0x209   : > { %2610 = vmatpush1.bf16.msra.mxu0 %v4246_v26 }
 0x20a   : > { %2611 = vmatprep.subr.bf16.mxu0 %v4251_v27 }
 0x20d   : > { %2612 = vmatpush1.bf16.msra.mxu0 %v4249_v34 }
 0x20e   : > { %2613 = vmatprep.subr.bf16.mxu0 %v4254_v35 }
 0x211   : > { %2614 = vmatpush1.bf16.msra.mxu0 %v4252_v36 }
 0x212   : > { %2615 = vmatprep.subr.bf16.mxu0 %v4257_v37 }
 0x215   : > { %2616 = vmatpush1.bf16.msra.mxu0 %v4255_v20 }
 0x216   : > { %2617 = vmatprep.subr.bf16.mxu0 %v4260_v41 }
 0x219   : > { %2618 = vmatpush1.bf16.msra.mxu0 %v4258_v25 }
 0x21a   : > { %2660 = vmatprep.subr.bf16.mxu0 %v4263_v44 }
 0x21c   : > { %2620 = vmatmul.mubr.bf16.vlgmr.msra.gmra.mrb[32].mxu0 %v5011_v46 }
 0x21d   : > { %2629 = vmatprep.mubr.bf16.mxu0 %v5028_v8  ;;  %2661 = vmatpush1.bf16.msra.mxu0 %v4261_v45 }
 0x21e   : > { %2662 = vmatprep.subr.bf16.mxu0 %v4266_v48 }
 0x221   : > { %2663 = vmatpush1.bf16.msra.mxu0 %v4264_v49 }
 0x222   : > { %2664 = vmatprep.subr.bf16.mxu0 %v4269_v50 }
 0x224   : > { %2630 = vmatmul.mubr.bf16.gmra.mrb[36].mxu0 %v5023_v4 }
 0x225   : > { %2639 = vmatprep.mubr.bf16.mxu0 %v5052_v43  ;;  %2665 = vmatpush1.bf16.msra.mxu0 %v4267_v51  ;;  %v5156_v51 = vrot.slane %v5136_v23, %v4989_v29 }
 0x226   : > { %2666 = vmatprep.subr.bf16.mxu0 %v4272_v52 }
 0x229   : > { %2667 = vmatpush1.bf16.msra.mxu0 %v4270_v53 }
 0x22a   : > { %2668 = vmatprep.subr.bf16.mxu0 %v4275_v54 }
 0x22c   : > { %2640 = vmatmul.mubr.bf16.gmra.mrb[40].mxu0 %v5049_v38 }
 0x22d   : > { %2649 = vmatprep.mubr.bf16.mxu0 %v5072_v17  ;;  %2669 = vmatpush1.bf16.msra.mxu0 %v4273_v55 }
 0x22e   : > { %2670 = vmatprep.subr.bf16.mxu0 %v4278_v56 }
 0x231   : > { %2671 = vmatpush1.bf16.msra.mxu0 %v4276_v57 }
 0x232   : > { %2672 = vmatprep.subr.bf16.mxu0 %v4281_v58 }
 0x234   : > { %2650 = vmatmul.mubr.bf16.gmra.mrb[44].mxu0 %v5069_v13 }
 0x235   : > { %2673 = vmatpush1.bf16.msra.mxu0 %v4279_v59  ;;  %2692 = vmatprep.mubr.bf16.mxu0 %v5067_v11 }
 0x236   : > { %2674 = vmatprep.subr.bf16.mxu0 %v4284_v60 }
 0x239   : > { %2675 = vmatpush1.bf16.msra.mxu0 %v4282_v61 }
 0x23a   : > { %2676 = vmatprep.subr.bf16.mxu0 %v4287_v62 }
 0x23d   : > { %2677 = vmatpush1.bf16.msra.mxu0 %v4285_v63 }
 0x23e   : > { %2678 = vmatprep.subr.bf16.mxu0 %v4290_v0 }
 0x241   : > { %2679 = vmatpush1.bf16.msra.mxu0 %v4288_v1 }
 0x242   : > { %2680 = vmatprep.subr.bf16.mxu0 %v4293_v6 }
 0x245   : > { %2681 = vmatpush1.bf16.msra.mxu0 %v4291_v7 }
 0x246   : > { %2682 = vmatprep.subr.bf16.mxu0 %v4296_v9 }
 0x249   : > { %2683 = vmatpush1.bf16.msra.mxu0 %v4294_v12 }
 0x24a   : > { %2684 = vmatprep.subr.bf16.mxu0 %v4299_v14 }
 0x24d   : > { %2685 = vmatpush1.bf16.msra.mxu0 %v4297_v15 }
 0x24e   : > { %2686 = vmatprep.subr.bf16.mxu0 %v4302_v33 }
 0x251   : > { %2687 = vmatpush1.bf16.msra.mxu0 %v4300_v16 }
 0x252   : > { %2688 = vmatprep.subr.bf16.mxu0 %v4305_v18 }
 0x255   : > { %2689 = vmatpush1.bf16.msra.mxu0 %v4303_v19 }
 0x256   : > { %2690 = vmatprep.subr.bf16.mxu0 %v4308_v21 }
 0x259   : > { %2691 = vmatpush1.bf16.msra.mxu0 %v4306_v22 }
 0x25c   : > { %2693 = vmatmul.mubr.bf16.vlgmr.msra.gmra.mrb[32].mxu0 %v5065_v32 }
 0x25d   : > { %2702 = vmatprep.mubr.bf16.mxu0 %v5085_v30 }
 0x264   : > { %2703 = vmatmul.mubr.bf16.gmra.mrb[36].mxu0 %v5081_v42 }
 0x265   : > { %2712 = vmatprep.mubr.bf16.mxu0 %v5093_v3 }
 0x26c   : > { %2713 = vmatmul.mubr.bf16.gmra.mrb[40].mxu0 %v5091_v2 }
 0x26d   : > { %2722 = vmatprep.mubr.bf16.mxu0 %v5101_v40 }
 0x274   : > { %2723 = vmatmul.mubr.bf16.gmra.mrb[44].mxu0 %v5099_v39 }
 0x2af   : > { %v2402_v26 = vpop.f32.mrb[16].mxu0  ;;  %v5142_v27 = vpop.f32.mrb[16].mxu1 }
 0x2b0   : > { %v5144_v34 = vpop.f32.mrb[17].mxu0  ;;  %v2550_v35 = vpop.f32.mrb[17].mxu1  ;;  %v3739_v61 = vadd.f32 %v2402_v26, %v5156_v51 }
 0x2b1   : > { %v3756_v36 = vadd.f32 %v2550_v35, %v5140_v24  ;;  %v2406_v37 = vpop.f32.mrb[18].mxu0  ;;  %v5147_v20 = vpop.f32.mrb[18].mxu1 }
 0x2b2   : > { %v5149_v41 = vpop.f32.mrb[19].mxu0  ;;  %v2554_v25 = vpop.f32.mrb[19].mxu1  ;;  %v3741_v12 = vadd.f32 %v2406_v37, %v5156_v51 }
 0x2b3   : > { %v3689_v44 = vmul.f32 -1.442695, %v3756_v36  ;;  %v3758_v45 = vadd.f32 %v2554_v25, %v5140_v24 }
 0x2b5   : > { %4309 = vpow2.f32 %v3689_v44  ;;  %v3692_v48 = vmul.f32 -1.442695, %v3758_v45 }
 0x2b7   : > { %v2412_v49 = vpop.f32.mrb[20].mxu0  ;;  %v5152_v50 = vpop.f32.mrb[20].mxu1  ;;  %4311 = vpow2.f32 %v3692_v48 }
 0x2b8   : > { %v5158_v52 = vpop.f32.mrb[21].mxu0  ;;  %v2560_v53 = vpop.f32.mrb[21].mxu1  ;;  %v3743_v35 = vadd.f32 %v2412_v49, %v5156_v51 }
 0x2b9   : > { %v3760_v54 = vadd.f32 %v2560_v53, %v5140_v24  ;;  %v2416_v55 = vpop.f32.mrb[22].mxu0  ;;  %v5161_v56 = vpop.f32.mrb[22].mxu1 }
 0x2ba   : > { %v5163_v57 = vpop.f32.mrb[23].mxu0  ;;  %v2564_v58 = vpop.f32.mrb[23].mxu1 }
 0x2bb   : > { %v3695_v59 = vmul.f32 -1.442695, %v3760_v54  ;;  %v3762_v60 = vadd.f32 %v2564_v58, %v5140_v24  ;;  %v3745_v54 = vadd.f32 %v2416_v55, %v5156_v51 }
 0x2bd   : > { %4313 = vpow2.f32 %v3695_v59  ;;  %v3698_v62 = vmul.f32 -1.442695, %v3762_v60 }
 0x2be   : > { %4315 = vtanh.f32 %v3739_v61 }
 0x2bf   : > { %v4310_v63 = vpop.eup %4309  ;;  %v2422_v0 = vpop.f32.mrb[24].mxu0  ;;  %4317 = vpow2.f32 %v3698_v62 }
 0x2c0   : > { %v5167_v1 = vpop.f32.mrb[24].mxu1  ;;  %v2829_v6 = vadd.f32 1.0, %v4310_v63  ;;  %v5169_v7 = vpop.f32.mrb[25].mxu0 }
 0x2c1   : > { %v2570_v9 = vpop.f32.mrb[25].mxu1  ;;  %v2426_v15 = vpop.f32.mrb[26].mxu0 }
 0x2c2   : > { %v3764_v14 = vadd.f32 %v2570_v9, %v5140_v24  ;;  %v5173_v33 = vpop.f32.mrb[26].mxu1  ;;  %4319 = vrcp.f32 %v2829_v6  ;;  %v5175_v16 = vpop.f32.mrb[27].mxu0 }
 0x2c3   : > { %v2574_v18 = vpop.f32.mrb[27].mxu1  ;;  %v4312_v19 = vpop.eup %4311  ;;  %4321 = vtanh.f32 %v3741_v12 }
 0x2c4   : > { %v3701_v21 = vmul.f32 -1.442695, %v3764_v14  ;;  %v2832_v22 = vadd.f32 1.0, %v4312_v19  ;;  %v3766_v26 = vadd.f32 %v2574_v18, %v5140_v24  ;;  %v3747_v19 = vadd.f32 %v2422_v0, %v5156_v51 }
 0x2c6   : > { %4323 = vrcp.f32 %v2832_v22  ;;  %v3704_v45 = vmul.f32 -1.442695, %v3766_v26 }
 0x2c7   : > { %v4314_v36 = vpop.eup %4313  ;;  %4325 = vpow2.f32 %v3701_v21  ;;  %v2432_v37 = vpop.f32.mrb[28].mxu0 }
 0x2c8   : > { %v5179_v25 = vpop.f32.mrb[28].mxu1  ;;  %v2835_v44 = vadd.f32 1.0, %v4314_v36  ;;  %v5181_v48 = vpop.f32.mrb[29].mxu0  ;;  %4327 = vtanh.f32 %v3743_v35 }
 0x2c9   : > { %v2580_v53 = vpop.f32.mrb[29].mxu1  ;;  %v2436_v59 = vpop.f32.mrb[30].mxu0 }
 0x2ca   : > { %v3768_v58 = vadd.f32 %v2580_v53, %v5140_v24  ;;  %v5185_v60 = vpop.f32.mrb[30].mxu1  ;;  %v4316_v49 = vpop.eup %4315  ;;  %4329 = vrcp.f32 %v2835_v44 }
 0x2cb   : > { %v5187_v61 = vpop.f32.mrb[31].mxu0  ;;  %v2584_v62 = vpop.f32.mrb[31].mxu1  ;;  %4331 = vpow2.f32 %v3704_v45 }
 0x2cc   : > { %v4318_v63 = vpop.eup %4317  ;;  %4333 = vtanh.f32 %v3745_v54  ;;  %v3707_v12 = vmul.f32 -1.442695, %v3768_v58  ;;  %v3770_v55 = vadd.f32 %v2584_v62, %v5140_v24  ;;  %v3749_v54 = vadd.f32 %v2426_v15, %v5156_v51 }
 0x2cd   : > { %v4320_v6 = vpop.eup %4319  ;;  %v2838_v9 = vadd.f32 1.0, %v4318_v63  ;;  %v3751_v63 = vadd.f32 %v2432_v37, %v5156_v51 }
 0x2ce   : > { %v5189_v14 = vmul.f32 %v4320_v6, %v4316_v49  ;;  %v4322_v18 = vpop.eup %4321  ;;  %v3710_v36 = vmul.f32 -1.442695, %v3770_v55 }
 0x2cf   : > { %4335 = vrcp.f32 %v2838_v9 }
 0x2d0   : > { %v4324_v21 = vpop.eup %4323  ;;  %4337 = vpow2.f32 %v3707_v12 }
 0x2d1   : > { %v4326_v22 = vpop.eup %4325  ;;  %v5193_v26 = vmul.f32 %v4324_v21, %v4322_v18  ;;  %4339 = vtanh.f32 %v3747_v19  ;;  %v3753_v19 = vadd.f32 %v2436_v59, %v5156_v51  ;;  %v5217_v51 = vld [vmem:[%s5515_s5] sm:$0x7] }
 0x2d2   : > { %v2841_v35 = vadd.f32 1.0, %v4326_v22  ;;  %v4328_v44 = vpop.eup %4327 }
 0x2d4   : > { %v4330_v53 = vpop.eup %4329  ;;  %4341 = vrcp.f32 %v2841_v35 }
 0x2d5   : > { %v5198_v24 = vmul.f32 %v4330_v53, %v4328_v44  ;;  %v4332_v58 = vpop.eup %4331  ;;  %4343 = vpow2.f32 %v3710_v36 }
 0x2d6   : > { %v4334_v0 = vpop.eup %4333  ;;  %v2844_v49 = vadd.f32 1.0, %v4332_v58  ;;  %4345 = vtanh.f32 %v3749_v54 }
 0x2d8   : > { %4347 = vrcp.f32 %v2844_v49 }
 0x2d9   : > { %v4336_v62 = vpop.eup %4335  ;;  %4349 = vtanh.f32 %v3751_v63 }
 0x2da   : > { %v5201_v6 = vmul.f32 %v4336_v62, %v4334_v0  ;;  %v4338_v9 = vpop.eup %4337  ;;  %v2934_v62 = vrot.slane %v5217_v51, %v4997_v31 }
 0x2db   : > { %v2847_v55 = vadd.f32 1.0, %v4338_v9  ;;  %v4340_v18 = vpop.eup %4339 }
 0x2dc   : > { %v2943_v9 = vpack.c.bf16 %v2934_v62, %v2934_v62 }
 0x2dd   : > { %4351 = vrcp.f32 %v2847_v55 }
 0x2de   : > { %v4342_v15 = vpop.eup %4341  ;;  %4353 = vtanh.f32 %v3753_v19  ;;  %2999 = vmatprep.mubr.bf16.mxu1 %v2943_v9  ;;  %v5228_v19 = vrot.slane %v5136_v23, %v5026_v5 }
 0x2df   : > { %v5206_v21 = vmul.f32 %v4342_v15, %v4340_v18  ;;  %v4344_v22 = vpop.eup %4343  ;;  %v2957_v18 = vld [vmem:[#allocation2] sm:$0x1]  ;;  %v5531_v15 = vmov 0  }
 0x2e0   : > { %v2850_v35 = vadd.f32 1.0, %v4344_v22  ;;  %v4346_v36 = vpop.eup %4345  ;;  %3924 = vset.pattern.permute.xlu0 %v5531_v15  ;;  %v5232_v22 = vrot.slane %v5136_v23, %v4997_v31 }
 0x2e1   : > { %2960 = vperm.xlu0 %3924, %v2957_v18  }
 0x2e2   : > { %v4348_v37 = vpop.eup %4347  ;;  %4355 = vrcp.f32 %v2850_v35  ;;  %v1323_v35 = vsub.s32 4, %v4986_v28  ;;  %v3750_v39 = vadd.f32 %v5175_v16, %v5232_v22 }
 0x2e3   : > { %v5208_v44 = vmul.f32 %v4348_v37, %v4346_v36  ;;  %v4350_v54 = vpop.eup %4349  ;;  %v1327_v36 = vsub.s32 5, %v4986_v28  ;;  %v3755_v37 = vadd.f32 %v5142_v27, %v5228_v19  ;;  %v3759_v28 = vadd.f32 %v5152_v50, %v5228_v19 }
 0x2e4   : > { %v3744_v27 = vadd.f32 %v5158_v52, %v5232_v22  ;;  %v3761_v52 = vadd.f32 %v5161_v56, %v5228_v19 }
 0x2e5   : > { %v5248_v62 = vrot.slane %v5136_v23, %v1327_v36  ;;  %4357 = vtanh.f32 %v3755_v37 }
 0x2e7   : > { %v4352_v58 = vpop.eup %4351 }
 0x2e8   : > { %v5212_v0 = vmul.f32 %v4352_v58, %v4350_v54  ;;  %v4354_v49 = vpop.eup %4353  ;;  %v3740_v54 = vadd.f32 %v5144_v34, %v5232_v22  ;;  %v3757_v58 = vadd.f32 %v5147_v20, %v5228_v19 }
 0x2ea   : > { %4359 = vtanh.f32 %v3740_v54 }
 0x2eb   : > { %4361 = vtanh.f32 %v3757_v58  ;;  %v3746_v58 = vadd.f32 %v5163_v57, %v5232_v22 }
 0x2ec   : > { %v4356_v59 = vpop.eup %4355 }
 0x2ed   : > { %v5221_v63 = vmul.f32 %v4356_v59, %v4354_v49  ;;  %v5243_v49 = vrot.slane %v5136_v23, %v1323_v35  ;;  %v3742_v59 = vadd.f32 %v5149_v41, %v5232_v22 }
 0x2ef   : > { %4363 = vtanh.f32 %v3742_v59 }
 0x2f0   : > { %4365 = vtanh.f32 %v3759_v28  ;;  %v3763_v28 = vadd.f32 %v5167_v1, %v5228_v19 }
 0x2f1   : > { %4367 = vtanh.f32 %v3744_v27  ;;  %v3748_v27 = vadd.f32 %v5169_v7, %v5232_v22 }
 0x32f   : > { %v2694_v34 = vpop.f32.mrb[32].mxu0 }
 0x330   : > { %v3771_v20 = vadd.f32 %v2694_v34, %v5243_v49  ;;  %v2696_v9 = vpop.f32.mrb[33].mxu0 }
 0x331   : > { %v3772_v18 = vadd.f32 %v2696_v9, %v5248_v62  ;;  %v2698_v41 = vpop.f32.mrb[34].mxu0 }
 0x332   : > { %v3690_v23 = vmul.f32 -1.442695, %v3771_v20  ;;  %v3773_v35 = vadd.f32 %v2698_v41, %v5243_v49  ;;  %v2700_v36 = vpop.f32.mrb[35].mxu0  ;;  %v5266_v20 = vpop.eup %4357 }
 0x333   : > { %v3691_v50 = vmul.f32 -1.442695, %v3772_v18  ;;  %v3774_v37 = vadd.f32 %v2700_v36, %v5248_v62  ;;  %v5269_v18 = vpop.eup %4359 }
 0x334   : > { %4369 = vpow2.f32 %v3690_v23  ;;  %v3693_v54 = vmul.f32 -1.442695, %v3773_v35  ;;  %v5272_v23 = vpop.eup %4361 }
 0x335   : > { %4371 = vpow2.f32 %v3691_v50  ;;  %v3694_v59 = vmul.f32 -1.442695, %v3774_v37  ;;  %v5275_v36 = vpop.eup %4363 }
 0x336   : > { %4373 = vpow2.f32 %v3693_v54  ;;  %v3765_v54 = vadd.f32 %v5173_v33, %v5228_v19 }
 0x337   : > { %4375 = vpow2.f32 %v3694_v59  ;;  %v2704_v34 = vpop.f32.mrb[36].mxu0 }
 0x338   : > { %4377 = vtanh.f32 %v3761_v52  ;;  %v3775_v56 = vadd.f32 %v2704_v34, %v5243_v49  ;;  %v2706_v9 = vpop.f32.mrb[37].mxu0  ;;  %v5278_v52 = vpop.eup %4365 }
 0x339   : > { %4379 = vtanh.f32 %v3746_v58  ;;  %v3776_v57 = vadd.f32 %v2706_v9, %v5248_v62  ;;  %v2708_v41 = vpop.f32.mrb[38].mxu0  ;;  %v5282_v59 = vpop.eup %4367 }
 0x33a   : > { %4381 = vtanh.f32 %v3763_v28  ;;  %v3696_v1 = vmul.f32 -1.442695, %v3775_v56  ;;  %v3777_v7 = vadd.f32 %v2708_v41, %v5243_v49  ;;  %v2710_v35 = vpop.f32.mrb[39].mxu0 }
 0x33b   : > { %4383 = vtanh.f32 %v3748_v27  ;;  %v3697_v50 = vmul.f32 -1.442695, %v3776_v57  ;;  %v3778_v37 = vadd.f32 %v2710_v35, %v5248_v62 }
 0x33c   : > { %4385 = vpow2.f32 %v3696_v1  ;;  %v3699_v58 = vmul.f32 -1.442695, %v3777_v7 }
 0x33d   : > { %4387 = vpow2.f32 %v3697_v50  ;;  %v3700_v28 = vmul.f32 -1.442695, %v3778_v37 }
 0x33e   : > { %v4370_v34 = vpop.eup %4369  ;;  %4389 = vpow2.f32 %v3699_v58 }
 0x33f   : > { %v4372_v56 = vpop.eup %4371  ;;  %v2830_v9 = vadd.f32 1.0, %v4370_v34  ;;  %4391 = vpow2.f32 %v3700_v28  ;;  %v2714_v27 = vpop.f32.mrb[40].mxu0 }
 0x340   : > { %v4374_v57 = vpop.eup %4373  ;;  %4393 = vtanh.f32 %v3765_v54  ;;  %v2831_v41 = vadd.f32 1.0, %v4372_v56  ;;  %v3779_v35 = vadd.f32 %v2714_v27, %v5243_v49  ;;  %v2716_v15 = vpop.f32.mrb[41].mxu0 }
 0x341   : > { %v4376_v55 = vpop.eup %4375  ;;  %4395 = vrcp.f32 %v2830_v9  ;;  %v2833_v33 = vadd.f32 1.0, %v4374_v57  ;;  %v3780_v1 = vadd.f32 %v2716_v15, %v5248_v62  ;;  %v2718_v7 = vpop.f32.mrb[42].mxu0 }
 0x342   : > { %v5286_v50 = vpop.eup %4377  ;;  %4397 = vrcp.f32 %v2831_v41  ;;  %v2834_v37 = vadd.f32 1.0, %v4376_v55  ;;  %v3702_v58 = vmul.f32 -1.442695, %v3779_v35  ;;  %v3781_v28 = vadd.f32 %v2718_v7, %v5243_v49  ;;  %v2720_v34 = vpop.f32.mrb[43].mxu0 }
 0x343   : > { %v5289_v53 = vpop.eup %4379  ;;  %4399 = vrcp.f32 %v2833_v33  ;;  %v3703_v54 = vmul.f32 -1.442695, %v3780_v1  ;;  %v3782_v56 = vadd.f32 %v2720_v34, %v5248_v62 }
 0x344   : > { %v5292_v27 = vpop.eup %4381  ;;  %4401 = vrcp.f32 %v2834_v37  ;;  %v3705_v9 = vmul.f32 -1.442695, %v3781_v28 }
 0x345   : > { %v5294_v15 = vpop.eup %4383  ;;  %4403 = vpow2.f32 %v3702_v58  ;;  %v3706_v57 = vmul.f32 -1.442695, %v3782_v56 }
 0x346   : > { %v4386_v41 = vpop.eup %4385  ;;  %4405 = vpow2.f32 %v3703_v54 }
 0x347   : > { %v4388_v55 = vpop.eup %4387  ;;  %v2836_v35 = vadd.f32 1.0, %v4386_v41  ;;  %4407 = vpow2.f32 %v3705_v9  ;;  %v2724_v7 = vpop.f32.mrb[44].mxu0 }
 0x348   : > { %v4390_v12 = vpop.eup %4389  ;;  %v2837_v45 = vadd.f32 1.0, %v4388_v55  ;;  %4409 = vpow2.f32 %v3706_v57  ;;  %v3783_v33 = vadd.f32 %v2724_v7, %v5243_v49  ;;  %v2726_v1 = vpop.f32.mrb[45].mxu0 }
 0x349   : > { %v4392_v34 = vpop.eup %4391  ;;  %4411 = vrcp.f32 %v2836_v35  ;;  %v2839_v37 = vadd.f32 1.0, %v4390_v12  ;;  %v3784_v28 = vadd.f32 %v2726_v1, %v5248_v62  ;;  %v2728_v10 = vpop.f32.mrb[46].mxu0 }
 0x34a   : > { %v5298_v58 = vpop.eup %4393  ;;  %4413 = vrcp.f32 %v2837_v45  ;;  %v2840_v54 = vadd.f32 1.0, %v4392_v34  ;;  %v3708_v56 = vmul.f32 -1.442695, %v3783_v33  ;;  %v3785_v9 = vadd.f32 %v2728_v10, %v5243_v49  ;;  %v2730_v41 = vpop.f32.mrb[47].mxu0 }
 0x34b   : > { %v4396_v31 = vpop.eup %4395  ;;  %4415 = vrcp.f32 %v2839_v37  ;;  %v3709_v57 = vmul.f32 -1.442695, %v3784_v28  ;;  %v3786_v55 = vadd.f32 %v2730_v41, %v5248_v62 }
 0x34c   : > { %v4398_v7 = vpop.eup %4397  ;;  %4417 = vrcp.f32 %v2840_v54  ;;  %v3711_v35 = vmul.f32 -1.442695, %v3785_v9  ;;  %v2902_v12 = vmul.f32 %v4396_v31, %v5269_v18 }
 0x34d   : > { %v4400_v1 = vpop.eup %4399  ;;  %4419 = vpow2.f32 %v3708_v56  ;;  %v3712_v45 = vmul.f32 -1.442695, %v3786_v55  ;;  %v5306_v33 = vmul.f32 %v4398_v7, %v5266_v20  ;;  %v3767_v56 = vadd.f32 %v5179_v25, %v5228_v19 }
 0x34e   : > { %v4402_v10 = vpop.eup %4401  ;;  %4421 = vpow2.f32 %v3709_v57  ;;  %v2905_v49 = vmul.f32 %v4400_v1, %v5275_v36  ;;  %v3769_v55 = vadd.f32 %v5185_v60, %v5228_v19 }
 0x34f   : > { %v4404_v34 = vpop.eup %4403  ;;  %4423 = vpow2.f32 %v3711_v35  ;;  %v5310_v62 = vmul.f32 %v4402_v10, %v5272_v23  ;;  %v3752_v23 = vadd.f32 %v5181_v48, %v5232_v22  ;;  %v3754_v35 = vadd.f32 %v5187_v61, %v5232_v22 }
 0x350   : > { %v4406_v37 = vpop.eup %4405  ;;  %v2842_v31 = vadd.f32 1.0, %v4404_v34  ;;  %4425 = vpow2.f32 %v3712_v45  ;;  %v2946_v18 = vpack.c.bf16 %v2905_v49, %v2902_v12 }
 0x351   : > { %v4408_v28 = vpop.eup %4407  ;;  %4427 = vtanh.f32 %v3750_v39  ;;  %v2843_v16 = vadd.f32 1.0, %v4406_v37  ;;  %v2947_v20 = vpack.c.bf16 %v5310_v62, %v5306_v33  ;;  %v5561_v39 = vpack.c.bf16 %v5193_v26, %v5189_v14 }
 0x352   : > { %v4410_v54 = vpop.eup %4409  ;;  %4429 = vrcp.f32 %v2842_v31  ;;  %v2845_v36 = vadd.f32 1.0, %v4408_v28  ;;  %2967 = vmatprep.subr.bf16.mxu1 %v2946_v18 }
 0x353   : > { %v4412_v9 = vpop.eup %4411  ;;  %4431 = vrcp.f32 %v2843_v16  ;;  %v2846_v41 = vadd.f32 1.0, %v4410_v54  ;;  %2968 = vmatpush1.bf16.xpose.msra.mxu1 %v5561_v39 }
 0x354   : > { %v4414_v57 = vpop.eup %4413  ;;  %4433 = vrcp.f32 %v2845_v36  ;;  %v2908_v25 = vmul.f32 %v4412_v9, %v5282_v59 }
 0x355   : > { %v4416_v7 = vpop.eup %4415  ;;  %4435 = vrcp.f32 %v2846_v41  ;;  %v2909_v48 = vmul.f32 %v4414_v57, %v5278_v52  ;;  %v5563_v57 = vpack.c.bf16 %v5208_v44, %v5206_v21  ;;  %v2938_v44 = vrot.slane %v5217_v51, %v5026_v5 }
 0x356   : > { %v4418_v12 = vpop.eup %4417  ;;  %4437 = vtanh.f32 %v3767_v56  ;;  %v2911_v1 = vmul.f32 %v4416_v7, %v5289_v53  ;;  %v5562_v53 = vpack.c.bf16 %v5201_v6, %v5198_v24 }
 0x357   : > { %v4420_v14 = vpop.eup %4419  ;;  %4439 = vtanh.f32 %v3752_v23  ;;  %v2912_v26 = vmul.f32 %v4418_v12, %v5286_v50 }
 0x358   : > { %v4422_v45 = vpop.eup %4421  ;;  %4441 = vtanh.f32 %v3769_v55  ;;  %v2848_v60 = vadd.f32 1.0, %v4420_v14  ;;  %v2949_v19 = vpack.c.bf16 %v2911_v1, %v2908_v25  ;;  %v2930_v1 = vrot.slane %v5217_v51, %v4989_v29 }
 0x359   : > { %v4424_v59 = vpop.eup %4423  ;;  %4443 = vtanh.f32 %v3754_v35  ;;  %v2849_v10 = vadd.f32 1.0, %v4422_v45  ;;  %v2950_v49 = vpack.c.bf16 %v2912_v26, %v2909_v48  ;;  %v5564_v14 = vpack.c.bf16 %v5221_v63, %v5212_v0 }
 0x35a   : > { %v4426_v61 = vpop.eup %4425  ;;  %4445 = vrcp.f32 %v2848_v60  ;;  %v2851_v22 = vadd.f32 1.0, %v4424_v59  ;;  %2969 = vmatprep.subr.bf16.mxu1 %v2949_v19  ;;  %v4687_v26 = vmov 0.0   ;;  %v2942_v21 = vpack.c.bf16 %v2930_v1, %v2930_v1 }
 0x35b   : > { %v4428_v52 = vpop.eup %4427  ;;  %4447 = vrcp.f32 %v2849_v10  ;;  %v2852_v34 = vadd.f32 1.0, %v4426_v61  ;;  %2970 = vmatpush1.bf16.xpose.msra.mxu1 %v5562_v53  ;;  %v2944_v0 = vpack.c.bf16 %v2938_v44, %v2938_v44  ;;  %v5565_v63 = vmov 0   ;;  %v5566_v10 = vld [vmem:[#allocation21_spill] sm:$0xff]  ;;  %v5567_v61 = vld [vmem:[#allocation19_spill] sm:$0xff] }
 0x35c   : > { %v4430_v50 = vpop.eup %4429  ;;  %4449 = vrcp.f32 %v2851_v22 }
 0x35d   : > { %v4432_v37 = vpop.eup %4431  ;;  %4451 = vrcp.f32 %v2852_v34  ;;  %v2914_v31 = vmul.f32 %v4430_v50, %v5294_v15 }
 0x35e   : > { %v4434_v18 = vpop.eup %4433  ;;  %v2915_v28 = vmul.f32 %v4432_v37, %v5292_v27 }
 0x35f   : > { %v4436_v16 = vpop.eup %4435  ;;  %v2917_v54 = vmul.f32 %v4434_v18, %v4428_v52 }
 0x360   : > { %v4438_v56 = vpop.eup %4437  ;;  %v2918_v36 = vmul.f32 %v4436_v16, %v5298_v58 }
 0x361   : > { %v4440_v9 = vpop.eup %4439  ;;  %v2952_v23 = vpack.c.bf16 %v2917_v54, %v2914_v31  ;;  %v5568_v31 = vld [vmem:[#allocation20_spill] sm:$0xff] }
 0x362   : > { %v4442_v41 = vpop.eup %4441  ;;  %v2953_v39 = vpack.c.bf16 %v2918_v36, %v2915_v28 }
 0x363   : > { %v4444_v24 = vpop.eup %4443  ;;  %2971 = vmatprep.subr.bf16.mxu1 %v2952_v23 }
 0x364   : > { %v4446_v6 = vpop.eup %4445  ;;  %2972 = vmatpush1.bf16.xpose.msra.mxu1 %v5563_v57 }
 0x365   : > { %v4448_v15 = vpop.eup %4447  ;;  %v2920_v55 = vmul.f32 %v4446_v6, %v4440_v9 }
 0x366   : > { %v4450_v25 = vpop.eup %4449  ;;  %v2921_v27 = vmul.f32 %v4448_v15, %v4438_v56 }
 0x367   : > { %v4452_v7 = vpop.eup %4451  ;;  %v2923_v35 = vmul.f32 %v4450_v25, %v4444_v24 }
 0x368   : > { %v2924_v48 = vmul.f32 %v4452_v7, %v4442_v41 }
 0x369   : > { %v2955_v12 = vpack.c.bf16 %v2923_v35, %v2920_v55 }
 0x36a   : > { %v2956_v58 = vpack.c.bf16 %v2924_v48, %v2921_v27 }
 0x36b   : > { %2973 = vmatprep.subr.bf16.mxu1 %v2955_v12 }
 0x36c   : > { %2974 = vmatpush1.bf16.xpose.msra.mxu1 %v5564_v14 }
 0x36d   : > { %3727 = vmatprep.subr.bf16.mxu1 %v4687_v26 }
 0x373   : > { %3000 = vmatmul.mubr.bf16.vlgmr.msra.gmra.mrb[32].mxu1 %v2942_v21 }
 0x374   : > { %3728 = vmatpush3.bf16.xpose.msra.mxu1 %v2947_v20  ;;  %3735 = vmatprep.mubr.msk.bf16.mxu1 %vm4688_vm0, %v4687_v26 }
 0x375   : > { %3729 = vmatprep.subr.bf16.mxu1 %v4687_v26 }
 0x37c   : > { %3730 = vmatpush3.bf16.xpose.msra.mxu1 %v2950_v49  ;;  %v3147_v49 = vld [vmem:[%s5517_s7] sm:$0xf] }
 0x37d   : > { %3731 = vmatprep.subr.bf16.mxu1 %v4687_v26  ;;  %v3156_v22 = vrot.slane %v3147_v49, %v5567_v61  ;;  %v3160_v37 = vrot.slane %v3147_v49, %v5026_v5  ;;  %v3164_v18 = vrot.slane %v3147_v49, %v5568_v31  ;;  %v3183_v5 = vld [vmem:[%s5518_s8] sm:$0x1] }
 0x384   : > { %3732 = vmatpush3.bf16.xpose.msra.mxu1 %v2953_v39 }
 0x385   : > { %3733 = vmatprep.subr.bf16.mxu1 %v4687_v26 }
 0x38c   : > { %3734 = vmatpush3.bf16.xpose.msra.mxu1 %v2956_v58 }
 0x38d   : > { %3065 = vmatprep.subr.bf16.mxu1 %v5013_v47  ;;  %v2961_v47 = vpop.permute.xlu0 %2960 }
 0x393   : > { %3736 = vmatmul.mubr.bf16.vlgmr.msra.gmra.mrb[32].mxu1 %v2944_v0 }
 0x394   : > { %3066 = vmatpush1.bf16.msra.mxu1 %v5011_v46  ;;  %3097 = vmatprep.mubr.bf16.mxu1 %v5565_v63  ;;  %v2966_v46 = vrot.slane %v2961_v47, %v4989_v29 }
 0x395   : > { %3067 = vmatprep.subr.bf16.mxu1 %v5028_v8 }
 0x398   : > { %3068 = vmatpush1.bf16.msra.mxu1 %v5023_v4 }
 0x399   : > { %3069 = vmatprep.subr.bf16.mxu1 %v5052_v43 }
 0x39c   : > { %3070 = vmatpush1.bf16.msra.mxu1 %v5049_v38 }
 0x39d   : > { %3071 = vmatprep.subr.bf16.mxu1 %v5072_v17 }
 0x3a0   : > { %3072 = vmatpush1.bf16.msra.mxu1 %v5069_v13 }
 0x3a1   : > { %3106 = vmatprep.subr.bf16.mxu1 %v5067_v11 }
 0x466   : > { %v3041_v51 = vpop.f32.mrb[32].mxu1 }
 0x467   : > { %v3787_v8 = vadd.f32 %v3041_v51, %v2966_v46  ;;  %v3737_v33 = vpop.f32.mrb[33].mxu1 }
 0x468   : > { %v3044_v62 = vpop.f32.mrb[34].mxu1 }
 0x469   : > { %v3738_v4 = vpop.f32.mrb[35].mxu1  ;;  %v3049_v20 = vsel %vm3047_vm1, %v3787_v8, -inf  ;;  %3048 = vst.msk [vmem:[%s5537_s23] sm:$0x1] %vm3047_vm1, %v3787_v8  ;;  %s4547_s23 = scalar_lea.vmem %s5399_s19, 16 }
 0x46a   : > { %3050 = vmax.xlane.f32.xlu0 %v3049_v20  ;;  %p4548_p2 = scmp.ne.s32.totalorder %s5399_s19, %s4547_s23 }
 0x46c   : > { %p4549_p4 = pnand %p4548_p2, %p4880_p8 }
 0x46e   : > { %p4550_p6 = pneg %p4549_p4 }
 0x4f7   : > { %v3051_v38 = vpop.xlane.xlu0 %3050 }
 0x4f8   : > { %v3052_v43 = vsub.f32 %v3787_v8, %v3051_v38 }
 0x4fa   : > { %v3053_v17 = vmul.f32 1.442695, %v3052_v43 }
 0x4fc   : > { %4453 = vpow2.f32 %v3053_v17 }
 0x506   : > { %v4454_v13 = vpop.eup %4453 }
 0x507   : > { %v3055_v11 = vsel %vm3047_vm1, %v4454_v13, 0.0 }
 0x508   : > { %3056 = vadd.xlane.f32.xlu1 %v3055_v11 }
 0x595   : > { %v3057_v45 = vpop.xlane.xlu1 %3056 }
 0x596   : > { %4455 = vrcp.f32 %v3057_v45 }
 0x5a0   : > { %v4456_v60 = vpop.eup %4455 }
 0x5a1   : > { %v3059_v19 = vmul.f32 %v4456_v60, %v4454_v13 }
 0x5a3   : > { %v3060_v59 = vpack.c.bf16 %v3059_v19, %v3059_v19 }
 0x5a5   : > { %3713 = vmatmul.mubr.msk.bf16.vlgmr.msra.gmra.mrb[36].mxu1 %vm3061_vm2, %v3060_v59 }
 0x5a6   : > { %3107 = vmatpush1.bf16.msra.mxu1 %v5065_v32  ;;  %3138 = vmatprep.mubr.bf16.mxu1 %v5565_v63  ;;  %v3152_v32 = vrot.slane %v3147_v49, %v4989_v29 }
 0x5a7   : > { %3108 = vmatprep.subr.bf16.mxu1 %v5085_v30 }
 0x5aa   : > { %3109 = vmatpush1.bf16.msra.mxu1 %v5081_v42 }
 0x5ab   : > { %3110 = vmatprep.subr.bf16.mxu1 %v5093_v3 }
 0x5ae   : > { %3111 = vmatpush1.bf16.msra.mxu1 %v5091_v2 }
 0x5af   : > { %3112 = vmatprep.subr.bf16.mxu1 %v5101_v40 }
 0x5b2   : > { %3113 = vmatpush1.bf16.msra.mxu1 %v5566_v10 }
 0x5b5   : > { %3714 = vmatmul.mubr.msk.bf16.vlgmr.msra.gmra.mrb[40].mxu1 %vm3061_vm2, %v3060_v59 }
 0x678   : > { %v3099_v30 = vpop.f32.mrb[36].mxu1 }
 0x679   : > { %v3169_v42 = vmul.f32 %v3152_v32, %v3099_v30  ;;  %v3101_v52 = vpop.f32.mrb[37].mxu1 }
 0x67a   : > { %v3170_v3 = vmul.f32 %v3156_v22, %v3101_v52  ;;  %v3103_v34 = vpop.f32.mrb[38].mxu1 }
 0x67b   : > { %v3174_v2 = vsel %vm3173_vm3, %v3169_v42, 0.0  ;;  %v3104_v40 = vpop.f32.mrb[39].mxu1 }
 0x67c   : > { %v3175_v53 = vsel %vm3173_vm3, %v3170_v3, 0.0 }
 0x67d   : > { %v3176_v50 = vadd.f32 %v3175_v53, %v3174_v2 }
 0x688   : > { %v3140_v28 = vpop.f32.mrb[40].mxu1 }
 0x689   : > { %v3171_v29 = vmul.f32 %v3160_v37, %v3140_v28  ;;  %v3142_v16 = vpop.f32.mrb[41].mxu1 }
 0x68a   : > { %v3172_v54 = vmul.f32 %v3164_v18, %v3142_v16  ;;  %v3144_v56 = vpop.f32.mrb[42].mxu1 }
 0x68b   : > { %v3177_v36 = vsel %vm3173_vm3, %v3171_v29, 0.0  ;;  %v3145_v9 = vpop.f32.mrb[43].mxu1 }
 0x68c   : > { %v3178_v23 = vadd.f32 %v3177_v36, %v3176_v50  ;;  %v3179_v41 = vsel %vm3173_vm3, %v3172_v54, 0.0 }
 0x68e   : > { %v3180_v39 = vadd.f32 %v3179_v41, %v3178_v23 }
 0x690   : > { %3181 = vadd.xlane.f32.xlu1 %v3180_v39 }
 0x71d   : > { %v3182_v24 = vpop.xlane.xlu1 %3181 }
 0x71e   : > { %v3184_v6 = vadd.f32 %v3183_v5, %v3182_v24 }
 0x720   : > { %v3715_v57 = vmul.f32 -1.442695, %v3184_v6  ;;  %3186 = vst.msk [vmem:[%s471_s17] sm:$0x1] %vm3185_vm4, %v3184_v6  ;;  %s4553_s17 = scalar_lea.vmem %s4552_s21, 32 }
 0x721   : > { %p4555_p13 = scmp.lt.s32.totalorder %s4553_s17, %s4547_s23 }
 0x722   : > { %4457 = vpow2.f32 %v3715_v57 }
 0x723   : > { %p4556_p3 = por %p4555_p13, %p4554_p11 }
 0x725   : > { %p4557_p7 = pnand %p4556_p3, %p4550_p6 }
 0x72c   : > { %v4458_v15 = vpop.eup %4457 }
 0x72d   : > { %v3190_v55 = vadd.f32 1.0, %v4458_v15 }
 0x72f   : > { %4459 = vrcp.f32 %v3190_v55 }
 0x739   : > { %v4460_v25 = vpop.eup %4459 }
 0x73a   : > { %vm3194_vm5 = vcmp.gt.f32.partialorder %v4460_v25, 0.5  ;;  %3193 = vst.msk [vmem:[%s5536_s28] sm:$0x1] %vm3185_vm4, %v4460_v25  ;;  %s5407_s28 = scalar_lea.sflag [#allocation11], %s3215_s30 }
 0x73b   : > { %v3195_v27 = vsel %vm3194_vm5, 1, %v5565_v63 }
 0x73c   : > { %v3196_v7 = vsel %vm3185_vm4, %v3195_v27, 0 }
 0x73d   : > { %v3198_v35 = vshrl.u32 %v3196_v7, 16  ;;  %v3197_v12 = vand.u32 65535, %v3196_v7 }
 0x73f   : > { %v3200_v48 = vcvt.s32.f32 %v3198_v35  ;;  %v3199_v58 = vcvt.s32.f32 %v3197_v12 }
 0x741   : > { %3203 = vadd.xlane.f32.xlu1 %v3200_v48 }
 0x745   : > { %3201 = vadd.xlane.f32.xlu1 %v3199_v58 }
 0x746   : > { %4560 = shalt.err (!%p4557_p7)
}
 0x747   : > { %s4561_s30 = scalar_lea.hbm %s5397_s22, 16  ;;  %s4565_s29 = scalar_lea.hbm %s5520_s10, 64 }
 0x748   : > { %p4562_p9 = scmp.ne.s32.totalorder %s5397_s22, %s4561_s30  ;;  %p4566_p5 = scmp.lt.u32.totalorder %s5397_s22, %s5520_s10 }
 0x749   : > { %p4567_p10 = scmp.lt.u32.totalorder %s4565_s29, %s4561_s30  ;;  %p4569_p2 = scmp.lt.u32.totalorder %s4561_s30, %s5397_s22 }
 0x74a   : > { %p4563_p12 = pnand %p4562_p9, %p4880_p8 }
 0x74b   : > { %p4568_p1 = por %p4567_p10, %p4566_p5 }
 0x74c   : > { %p4564_p0 = pneg %p4563_p12 }
 0x74d   : > { %p4570_p4 = por %p4569_p2, %p4568_p1 }
 0x74f   : > { %p4571_p6 = pnand %p4570_p4, %p4564_p0 }
 0x751   : > { %4574 = shalt.err (!%p4571_p6)
}
 0x752   : > { %3851 = dma.vmem_to_hbm [thread:$0]  (%p4880_p8), %s5399_s19, 16, %s5397_s22, %s5407_s28  }
 0x753   : > { %s5569_s23 = scalar_lea.vmem [#allocation9], %s4932_s27  ;;  %s5437_s30 = scalar_lea.hbm %s5521_s11, %s5391_s18 }
 0x754   : > { %s3235_s0 = sshll.u32 %s5569_s23, 4  ;;  %s5570_s15 = scalar_lea.vmem [#allocation12], %s4932_s27  ;;  %s5439_s0 = int_to_ptr.vmem [resolvable:$true] %s3235_s0 }
 0x755   : > { %s5443_s29 = sshll.u32 %s5570_s15, 4  ;;  %s3212_s21 = scalar_lea.sflag [#allocation5], %s4932_s27  ;;  %s3262_s29 = int_to_ptr.vmem [resolvable:$true] %s5443_s29 }
 0x756   : > { %s4575_s1 = scalar_lea.vmem %s5439_s0, 16  ;;  %s4690_s22 = smov [#allocation9]  }
 0x757   : > { %p4576_p11 = scmp.ne.s32.totalorder %s5439_s0, %s4575_s1  ;;  %s4579_s19 = sshll.u32 %s4690_s22, 4  ;;  %s4580_s19 = int_to_ptr.vmem [resolvable:$false] %s4579_s19 }
 0x758   : > { %s4581_s23 = scalar_lea.vmem %s4580_s19, 32  ;;  %p4582_p7 = scmp.lt.s32.totalorder %s5439_s0, %s4580_s19 }
 0x759   : > { %p4577_p13 = pnand %p4576_p11, %p4880_p8  ;;  %p4583_p9 = scmp.lt.s32.totalorder %s4581_s23, %s4575_s1 }
 0x75b   : > { %p4578_p3 = pneg %p4577_p13  ;;  %p4584_p12 = por %p4583_p9, %p4582_p7 }
 0x75d   : > { %p4585_p0 = pnand %p4584_p12, %p4578_p3 }
 0x75f   : > { %4588 = shalt.err (!%p4585_p0)
}
 0x760   : > { %s4589_s27 = scalar_lea.hbm %s5405_s14, 16  ;;  %s4593_s12 = scalar_lea.hbm %s5519_s9, 64 }
 0x761   : > { %p4590_p5 = scmp.ne.s32.totalorder %s5405_s14, %s4589_s27  ;;  %p4594_p2 = scmp.lt.u32.totalorder %s5405_s14, %s5519_s9 }
 0x762   : > { %p4595_p4 = scmp.lt.u32.totalorder %s4593_s12, %s4589_s27  ;;  %p4597_p11 = scmp.lt.u32.totalorder %s4589_s27, %s5405_s14 }
 0x763   : > { %p4591_p10 = pnand %p4590_p5, %p4880_p8 }
 0x764   : > { %p4596_p6 = por %p4595_p4, %p4594_p2 }
 0x765   : > { %p4592_p1 = pneg %p4591_p10 }
 0x766   : > { %p4598_p13 = por %p4597_p11, %p4596_p6 }
 0x768   : > { %p4599_p3 = pnand %p4598_p13, %p4592_p1 }
 0x76a   : > { %4602 = shalt.err (!%p4599_p3)
}
 0x76b   : > { %3850 = dma.vmem_to_hbm [thread:$0]  (%p4880_p8), %s5439_s0, 16, %s5405_s14, %s3212_s21  }
 0x76c   : > { %s4603_s1 = scalar_lea.vmem %s3262_s29, 16  ;;  %s4691_s19 = smov [#allocation12]  }
 0x76d   : > { %p4604_p7 = scmp.ne.s32.totalorder %s3262_s29, %s4603_s1  ;;  %s4607_s23 = sshll.u32 %s4691_s19, 4  ;;  %s4608_s23 = int_to_ptr.vmem [resolvable:$false] %s4607_s23 }
 0x76e   : > { %s4609_s27 = scalar_lea.vmem %s4608_s23, 32  ;;  %p4610_p0 = scmp.lt.s32.totalorder %s3262_s29, %s4608_s23 }
 0x76f   : > { %p4605_p9 = pnand %p4604_p7, %p4880_p8  ;;  %p4611_p5 = scmp.lt.s32.totalorder %s4609_s27, %s4603_s1 }
 0x771   : > { %p4606_p12 = pneg %p4605_p9  ;;  %p4612_p10 = por %p4611_p5, %p4610_p0 }
 0x773   : > { %p4613_p1 = pnand %p4612_p10, %p4606_p12 }
 0x775   : > { %4616 = shalt.err (!%p4613_p1)
}
 0x776   : > { %s4617_s14 = scalar_lea.hbm %s5437_s30, 16  ;;  %s4621_s18 = scalar_lea.hbm %s5521_s11, 64 }
 0x777   : > { %p4618_p2 = scmp.ne.s32.totalorder %s5437_s30, %s4617_s14  ;;  %p4622_p11 = scmp.lt.u32.totalorder %s5437_s30, %s5521_s11 }
 0x778   : > { %p4623_p13 = scmp.lt.u32.totalorder %s4621_s18, %s4617_s14  ;;  %p4625_p7 = scmp.lt.u32.totalorder %s4617_s14, %s5437_s30 }
 0x779   : > { %p4619_p4 = pnand %p4618_p2, %p4880_p8 }
 0x77a   : > { %p4624_p3 = por %p4623_p13, %p4622_p11 }
 0x77b   : > { %p4620_p6 = pneg %p4619_p4 }
 0x77c   : > { %p4626_p9 = por %p4625_p7, %p4624_p3 }
 0x77e   : > { %p4627_p12 = pnand %p4626_p9, %p4620_p6 }
 0x780   : > { %4630 = shalt.err (!%p4627_p12)
}
 0x781   : > { %3852 = dma.vmem_to_hbm [thread:$0]  (%p4880_p8), %s3262_s29, 16, %s5437_s30, %s5407_s28   ;;  %vm3209_vm6 = vcmask 0  }
 0x782   : > { %p483_p0 = scmp.lt.s32.totalorder %s4781_s6, 3  ;;  %s5571_s1 = sld [smem:[#allocation24_spill]] }
 0x784   : > { %s5581_s6 = smov (!%p483_p0, %s4781_s6), 3 }
 0x788   : > { %s485_s19 = scalar_lea.vmem %s5571_s1, %s5581_s6 }
 0x7ce   : > { %v3204_v1 = vpop.xlane.xlu1 %3203 }
 0x7cf   : > { %v3206_v14 = vcvt.f32.s32 %v3204_v1 }
 0x7d1   : > { %v3207_v21 = vshll.u32 %v3206_v14, 16 }
 0x7d2   : > { %v3202_v26 = vpop.xlane.xlu1 %3201 }
 0x7d3   : > { %v3205_v44 = vcvt.f32.s32 %v3202_v26 }
 0x7d5   : > { %v3208_v0 = vadd.s32 %v3207_v21, %v3205_v44 }
 0x7d7   : > { %3210 = vst.msk [vmem:[%s485_s19] sm:$0x1] %vm3209_vm6, %v3208_v0 }
 0x7d8 PF: > { %s5572_s16 = sld [smem:[#allocation17_spill]]  ;;  %s5573_s23 = sld [smem:[#allocation18_spill]] }
 0x7d9   : > { %p3882_p5 = scmp.ge.s32.totalorder %s4677_s26, 2 }
 0x7de   : > { %s3276_s28 = sand.u32 1, %s5572_s16   ;;  %p5574_p8 = scmp.ne.s32.totalorder %s5573_s23, 0 }
 0x7df   : > { %s3277_s30 = scalar_lea.sflag [#allocation5], %s3276_s28 }
 0x7e0   : > { %p3868_p10 = pnand %p3882_p5, %p5574_p8 }
 0x7e2   : > { %4656 = dma.done.wait (!%p3868_p10), %s3277_s30, 16  }
 0x7e3   : > { %4658 = vsyncadd (!%p3868_p10), %s3277_s30, 4294967280  ;;  %s5575_s29 = sadd.s32 4294967294, %s4677_s26  }
 0x7e4   : > { %s3284_s27 = sand.u32 1, %s5575_s29  }
 0x7e5   : > { %s3285_s14 = scalar_lea.sflag [#allocation11], %s3284_s27 }
 0x7e6   : > { %4660 = dma.done.wait (!%p3868_p10), %s3285_s14, 32  }
 0x7e7   : > { %4662 = vsyncadd (!%p3868_p10), %s3285_s14, 4294967264  ;;  %p32_p1 = scmp.ge.s32.totalorder %s4867_s20, 6   ;;  %s5576_s23 = smov %s4669_s24 }
 0x7e8   : > { %s5577_s24 = smov %s4673_s25  ;;  %s5578_s25 = smov %s4876_s13 }
 0x7e9   : > { %s5579_s26 = smov %s4867_s20  ;;  %34 = sbr.rel (!%p32_p1) target bundleno = 12 (0xc), region = 153 }
 0x7f0   :  { %3303 = vsyncpa [#allocation4], 1 }
 0x7f1   :  { %3305 = vsyncpa [#allocation4 + $0x1], 1 }
 0x7f2   :  { %3306 = vsyncpa [#allocation7], 1 }
 0x7f3   :  { %3307 = vsyncpa [#allocation5], 1 }
 0x7f4   :  { %3309 = vsyncpa [#allocation5 + $0x1], 1 }
 0x7f5   :  { %3310 = vsyncpa [#allocation11], 1 }
 0x7f6   :  { %3312 = vsyncpa [#allocation11 + $0x1], 1 }

</bundles_post_ra>
